<compile_context>
chip_gen: v6e
topology: v6e:2x2x1
jax: 0.10.0
libtpu: 0.0.40
codegen_flags: <defaults>
</compile_context>

<pallas_src>
import jax
import jax.numpy as jnp
from jax.experimental import pallas as pl
from jax.experimental.pallas import tpu as pltpu

IGNORE_INDEX = 255
# Cityscapes class weights from the module's __init__ (baked into the kernel).
CLASS_WEIGHTS = (0.8373, 0.918, 0.866, 1.0345, 1.0166, 0.9969, 0.9754, 1.0489,
                 0.8786, 1.0023, 0.9539, 0.9843, 1.1116, 0.9037, 1.0865, 1.0955,
                 1.0865, 1.1529, 1.0507)
NUM_CLASSES = len(CLASS_WEIGHTS)          # 19


# ---------------------------------------------------------------------------
# Fused kernel: per output-row tile, upsample the coarse logits for every class
# with two small matmuls, then compute the weighted/masked NLL and add it into
# per-batch partial-sum accumulators.
# ---------------------------------------------------------------------------
def _fused_upsample_ce_kernel(coarse_ref, ry_ref, rx_ref, tgt_ref,
                              loss_ref, wsum_ref):
    # loss_ref / wsum_ref are per-batch accumulators, resident across the row
    # tile (reduction) axis; initialize at the first row tile of each batch.
    @pl.when(pl.program_id(1) == 0)
    def _():
        loss_ref[...] = jnp.zeros_like(loss_ref)
        wsum_ref[...] = jnp.zeros_like(wsum_ref)

    ry = ry_ref[...]                       # (tile_h, Hp)  row-interp weights
    rx = rx_ref[...]                       # (Wp, W)       col-interp weights
    tgt = tgt_ref[0]                       # (tile_h, W)   int32 labels

    # Fused separable bilinear upsample (align_corners=True):
    #   logits_c = Ry_tile @ coarse[c] @ Rx   -> (tile_h, W) per class.
    logits = []
    for c in range(NUM_CLASSES):
        rows = jnp.dot(ry, coarse_ref[0, c],
                       preferred_element_type=jnp.float32)          # (tile_h, Wp)
        logits.append(jnp.dot(rows, rx,
                              preferred_element_type=jnp.float32))  # (tile_h, W)

    # Numerically stable log-softmax over classes: elementwise over 19 slabs.
    m = logits[0]
    for c in range(1, NUM_CLASSES):
        m = jnp.maximum(m, logits[c])

    sumexp = jnp.zeros_like(m)
    sel_logit = jnp.zeros_like(m)          # logit of the target class
    sel_w = jnp.zeros_like(m)              # class weight of the target class
    for c in range(NUM_CLASSES):
        sumexp = sumexp + jnp.exp(logits[c] - m)
        onehot = (tgt == c).astype(jnp.float32)
        sel_logit = sel_logit + onehot * logits[c]
        sel_w = sel_w + onehot * CLASS_WEIGHTS[c]

    # Pixels with ignore_index match no class, so sel_w is already 0 there; the
    # explicit mask also keeps the nll term clean.
    valid = (tgt != IGNORE_INDEX).astype(jnp.float32)
    nll = m + jnp.log(sumexp) - sel_logit            # -log softmax[target]
    wmask = sel_w * valid

    loss_ref[0] += wmask * nll
    wsum_ref[0] += wmask


# ---------------------------------------------------------------------------
# Host-side helpers (tiny arrays only).
# ---------------------------------------------------------------------------
def _interp_matrix(out_size, in_size):
    """Dense 1-D bilinear interpolation matrix (out_size, in_size),
    align_corners=True semantics (matches F.upsample)."""
    if out_size == 1 or in_size == 1:
        src = jnp.zeros((out_size,), jnp.float32)
    else:
        src = jnp.arange(out_size, dtype=jnp.float32) * (
            (in_size - 1) / (out_size - 1))
    i0 = jnp.clip(jnp.floor(src).astype(jnp.int32), 0, in_size - 1)
    i1 = jnp.minimum(i0 + 1, in_size - 1)
    frac = src - i0.astype(jnp.float32)
    cols = jnp.arange(in_size, dtype=jnp.int32)
    m = ((cols[None, :] == i0[:, None]).astype(jnp.float32) * (1.0 - frac)[:, None]
         + (cols[None, :] == i1[:, None]).astype(jnp.float32) * frac[:, None])
    return m


def _choose_tile_h(H, W, C, slab_budget_bytes=6 * 1024 * 1024):
    """Largest row tile that divides H, is a multiple of 8 (or equals H), and
    keeps the C per-class (tile_h, W) f32 slabs within the VMEM budget."""
    if H % 8 != 0:
        return H                            # tiny / odd H: single full tile
    t = slab_budget_bytes // max(1, C * W * 4)
    t = int(max(8, min(t, H)))
    t = (t // 8) * 8
    while H % t != 0:
        t -= 8
    return t


def criterion_cross_entropy(preds, target):
    """preds: (N, 19, Hp, Wp) float logits; target: (N, H, W) int labels.

    Equivalent to nn.CrossEntropyLoss(weight=CLASS_WEIGHTS, ignore_index=255)
    applied to F.upsample(preds, (H, W), mode='bilinear', align_corners=True).
    """
    N, C, Hp, Wp = preds.shape
    H, W = target.shape[1], target.shape[2]
    assert C == NUM_CLASSES

    preds = preds.astype(jnp.float32)
    target = target.astype(jnp.int32)

    ry = _interp_matrix(H, Hp)                 # (H, Hp)
    rx = _interp_matrix(W, Wp).T               # (Wp, W)

    tile_h = _choose_tile_h(H, W, C)
    grid = (N, H // tile_h)

    loss_part, wsum_part = pl.pallas_call(
        _fused_upsample_ce_kernel,
        out_shape=(jax.ShapeDtypeStruct((N, tile_h, W), jnp.float32),
                   jax.ShapeDtypeStruct((N, tile_h, W), jnp.float32)),
        grid=grid,
        in_specs=[
            # Coarse logits for batch n: small, resident across all row tiles.
            pl.BlockSpec((1, C, Hp, Wp), lambda n, r: (n, 0, 0, 0)),
            # Row-interp weights for this output-row tile.
            pl.BlockSpec((tile_h, Hp), lambda n, r: (r, 0)),
            # Column-interp weights: fully resident.
            pl.BlockSpec((Wp, W), lambda n, r: (0, 0)),
            # Target labels for this tile.
            pl.BlockSpec((1, tile_h, W), lambda n, r: (n, r, 0)),
        ],
        out_specs=(
            pl.BlockSpec((1, tile_h, W), lambda n, r: (n, 0, 0)),
            pl.BlockSpec((1, tile_h, W), lambda n, r: (n, 0, 0)),
        ),
        compiler_params=pltpu.CompilerParams(
            dimension_semantics=("parallel", "arbitrary"),
            vmem_limit_bytes=32 * 1024 * 1024),
    )(preds, ry, rx, target)

    # reduction='mean' with class weights: sum(w*nll) / sum(w) over valid pixels.
    loss_sum = jnp.sum(loss_part, dtype=jnp.float32)
    w_sum = jnp.sum(wsum_part, dtype=jnp.float32)
    # Guard the all-ignored (0/0) case.
    return jnp.where(w_sum > 0, loss_sum / w_sum, jnp.float32(0.0))


if __name__ == "__main__":
    key = jax.random.PRNGKey(0)
    k1, k2 = jax.random.split(key)

    N, C, Hp, Wp = 2, NUM_CLASSES, 8, 8     # coarse logits resolution
    H, W = 16, 16                           # label-map resolution

    preds = jax.random.normal(k1, (N, C, Hp, Wp), dtype=jnp.float32)
    target = jax.random.randint(k2, (N, H, W), 0, NUM_CLASSES + 1,
                                dtype=jnp.int32)
    # some pixels get ignore_index=255 to exercise masking
    target = jnp.where(target == NUM_CLASSES, IGNORE_INDEX, target)

    loss = jax.jit(criterion_cross_entropy)(preds, target)
    jax.block_until_ready(loss)
    print("KERNEL_OK")
</pallas_src>

<mosaic_0001>
module attributes {stable_mosaic.version = 11 : i64} {
  func.func @_fused_upsample_ce_kernel(%arg0: i32, %arg1: i32, %arg2: memref<1x19x8x8xf32, #tpu.memory_space<vmem>>, %arg3: memref<16x8xf32, #tpu.memory_space<vmem>>, %arg4: memref<8x16xf32, #tpu.memory_space<vmem>>, %arg5: memref<1x16x16xi32, #tpu.memory_space<vmem>>, %arg6: memref<1x16x16xf32, #tpu.memory_space<vmem>>, %arg7: memref<1x16x16xf32, #tpu.memory_space<vmem>>) attributes {dimension_semantics = [#tpu.dimension_semantics<parallel>, #tpu.dimension_semantics<arbitrary>], iteration_bounds = array<i64: 2, 1>, scalar_prefetch = 0 : i64, scratch_operands = 0 : i64, tpu.core_type = #tpu.core_type<tc>, window_params = [{transform_indices = @transform_0, window_bounds = array<i64: 1, 19, 8, 8>}, {transform_indices = @transform_1, window_bounds = array<i64: 16, 8>}, {pipeline_mode = #tpu.pipeline_mode<synchronous>, transform_indices = @transform_2, window_bounds = array<i64: 8, 16>}, {transform_indices = @transform_3, window_bounds = array<i64: 1, 16, 16>}, {transform_indices = @transform_4, window_bounds = array<i64: 1, 16, 16>}, {transform_indices = @transform_5, window_bounds = array<i64: 1, 16, 16>}]} {
    %c0_i32 = arith.constant 0 : i32
    %0 = arith.cmpi eq, %arg1, %c0_i32 : i32
    %1 = arith.extui %0 : i1 to i32
    %c0_i32_0 = arith.constant 0 : i32
    %2 = arith.cmpi ne, %1, %c0_i32_0 : i32
    scf.if %2 {
      %cst_137 = arith.constant 0.000000e+00 : f32
      %353 = vector.broadcast %cst_137 : f32 to vector<1x16x16xf32>
      %c0_138 = arith.constant 0 : index
      %c0_139 = arith.constant 0 : index
      %c0_140 = arith.constant 0 : index
      %354 = vector.load %arg6[%c0_138, %c0_139, %c0_140] : memref<1x16x16xf32, #tpu.memory_space<vmem>>, vector<1x16x16xf32>
      tpu.vector_store %arg6[%c0_138, %c0_139, %c0_140], %353 {strides = array<i32>} : memref<1x16x16xf32, #tpu.memory_space<vmem>>, vector<1x16x16xf32>,
      %cst_141 = arith.constant 0.000000e+00 : f32
      %355 = vector.broadcast %cst_141 : f32 to vector<1x16x16xf32>
      %c0_142 = arith.constant 0 : index
      %c0_143 = arith.constant 0 : index
      %c0_144 = arith.constant 0 : index
      %356 = vector.load %arg7[%c0_142, %c0_143, %c0_144] : memref<1x16x16xf32, #tpu.memory_space<vmem>>, vector<1x16x16xf32>
      tpu.vector_store %arg7[%c0_142, %c0_143, %c0_144], %355 {strides = array<i32>} : memref<1x16x16xf32, #tpu.memory_space<vmem>>, vector<1x16x16xf32>,
    } else {
    }
    %c0 = arith.constant 0 : index
    %c0_1 = arith.constant 0 : index
    %3 = vector.load %arg3[%c0, %c0_1] : memref<16x8xf32, #tpu.memory_space<vmem>>, vector<16x8xf32>
    %c0_2 = arith.constant 0 : index
    %c0_3 = arith.constant 0 : index
    %4 = vector.load %arg4[%c0_2, %c0_3] : memref<8x16xf32, #tpu.memory_space<vmem>>, vector<8x16xf32>
    %c0_4 = arith.constant 0 : index
    %c0_5 = arith.constant 0 : index
    %c0_6 = arith.constant 0 : index
    %5 = vector.load %arg5[%c0_4, %c0_5, %c0_6] : memref<1x16x16xi32, #tpu.memory_space<vmem>>, vector<1x16x16xi32>
    %6 = vector.shape_cast %5 : vector<1x16x16xi32> to vector<16x16xi32>
    %c0_7 = arith.constant 0 : index
    %c0_8 = arith.constant 0 : index
    %c0_9 = arith.constant 0 : index
    %c0_10 = arith.constant 0 : index
    %7 = vector.load %arg2[%c0_7, %c0_8, %c0_9, %c0_10] : memref<1x19x8x8xf32, #tpu.memory_space<vmem>>, vector<1x1x8x8xf32>
    %8 = vector.shape_cast %7 : vector<1x1x8x8xf32> to vector<8x8xf32>
    %cst = arith.constant dense<0.000000e+00> : vector<16x8xf32>
    %9 = tpu.matmul %3, %8, %cst {dimension_numbers = #tpu.dot_dimension_numbers<[1], [0], [0], [1], [0, 0, 1, 1], [], []>} : vector<16x8xf32>, vector<8x8xf32>, vector<16x8xf32> -> vector<16x8xf32>
    %cst_11 = arith.constant dense<0.000000e+00> : vector<16x16xf32>
    %10 = tpu.matmul %9, %4, %cst_11 {dimension_numbers = #tpu.dot_dimension_numbers<[1], [0], [0], [1], [0, 0, 1, 1], [], []>} : vector<16x8xf32>, vector<8x16xf32>, vector<16x16xf32> -> vector<16x16xf32>
    %c0_12 = arith.constant 0 : index
    %c1 = arith.constant 1 : index
    %c0_13 = arith.constant 0 : index
    %c0_14 = arith.constant 0 : index
    %11 = vector.load %arg2[%c0_12, %c1, %c0_13, %c0_14] : memref<1x19x8x8xf32, #tpu.memory_space<vmem>>, vector<1x1x8x8xf32>
    %12 = vector.shape_cast %11 : vector<1x1x8x8xf32> to vector<8x8xf32>
    %cst_15 = arith.constant dense<0.000000e+00> : vector<16x8xf32>
    %13 = tpu.matmul %3, %12, %cst_15 {dimension_numbers = #tpu.dot_dimension_numbers<[1], [0], [0], [1], [0, 0, 1, 1], [], []>} : vector<16x8xf32>, vector<8x8xf32>, vector<16x8xf32> -> vector<16x8xf32>
    %cst_16 = arith.constant dense<0.000000e+00> : vector<16x16xf32>
    %14 = tpu.matmul %13, %4, %cst_16 {dimension_numbers = #tpu.dot_dimension_numbers<[1], [0], [0], [1], [0, 0, 1, 1], [], []>} : vector<16x8xf32>, vector<8x16xf32>, vector<16x16xf32> -> vector<16x16xf32>
    %c0_17 = arith.constant 0 : index
    %c2 = arith.constant 2 : index
    %c0_18 = arith.constant 0 : index
    %c0_19 = arith.constant 0 : index
    %15 = vector.load %arg2[%c0_17, %c2, %c0_18, %c0_19] : memref<1x19x8x8xf32, #tpu.memory_space<vmem>>, vector<1x1x8x8xf32>
    %16 = vector.shape_cast %15 : vector<1x1x8x8xf32> to vector<8x8xf32>
    %cst_20 = arith.constant dense<0.000000e+00> : vector<16x8xf32>
    %17 = tpu.matmul %3, %16, %cst_20 {dimension_numbers = #tpu.dot_dimension_numbers<[1], [0], [0], [1], [0, 0, 1, 1], [], []>} : vector<16x8xf32>, vector<8x8xf32>, vector<16x8xf32> -> vector<16x8xf32>
    %cst_21 = arith.constant dense<0.000000e+00> : vector<16x16xf32>
    %18 = tpu.matmul %17, %4, %cst_21 {dimension_numbers = #tpu.dot_dimension_numbers<[1], [0], [0], [1], [0, 0, 1, 1], [], []>} : vector<16x8xf32>, vector<8x16xf32>, vector<16x16xf32> -> vector<16x16xf32>
    %c0_22 = arith.constant 0 : index
    %c3 = arith.constant 3 : index
    %c0_23 = arith.constant 0 : index
    %c0_24 = arith.constant 0 : index
    %19 = vector.load %arg2[%c0_22, %c3, %c0_23, %c0_24] : memref<1x19x8x8xf32, #tpu.memory_space<vmem>>, vector<1x1x8x8xf32>
    %20 = vector.shape_cast %19 : vector<1x1x8x8xf32> to vector<8x8xf32>
    %cst_25 = arith.constant dense<0.000000e+00> : vector<16x8xf32>
    %21 = tpu.matmul %3, %20, %cst_25 {dimension_numbers = #tpu.dot_dimension_numbers<[1], [0], [0], [1], [0, 0, 1, 1], [], []>} : vector<16x8xf32>, vector<8x8xf32>, vector<16x8xf32> -> vector<16x8xf32>
    %cst_26 = arith.constant dense<0.000000e+00> : vector<16x16xf32>
    %22 = tpu.matmul %21, %4, %cst_26 {dimension_numbers = #tpu.dot_dimension_numbers<[1], [0], [0], [1], [0, 0, 1, 1], [], []>} : vector<16x8xf32>, vector<8x16xf32>, vector<16x16xf32> -> vector<16x16xf32>
    %c0_27 = arith.constant 0 : index
    %c4 = arith.constant 4 : index
    %c0_28 = arith.constant 0 : index
    %c0_29 = arith.constant 0 : index
    %23 = vector.load %arg2[%c0_27, %c4, %c0_28, %c0_29] : memref<1x19x8x8xf32, #tpu.memory_space<vmem>>, vector<1x1x8x8xf32>
    %24 = vector.shape_cast %23 : vector<1x1x8x8xf32> to vector<8x8xf32>
    %cst_30 = arith.constant dense<0.000000e+00> : vector<16x8xf32>
    %25 = tpu.matmul %3, %24, %cst_30 {dimension_numbers = #tpu.dot_dimension_numbers<[1], [0], [0], [1], [0, 0, 1, 1], [], []>} : vector<16x8xf32>, vector<8x8xf32>, vector<16x8xf32> -> vector<16x8xf32>
    %cst_31 = arith.constant dense<0.000000e+00> : vector<16x16xf32>
    %26 = tpu.matmul %25, %4, %cst_31 {dimension_numbers = #tpu.dot_dimension_numbers<[1], [0], [0], [1], [0, 0, 1, 1], [], []>} : vector<16x8xf32>, vector<8x16xf32>, vector<16x16xf32> -> vector<16x16xf32>
    %c0_32 = arith.constant 0 : index
    %c5 = arith.constant 5 : index
    %c0_33 = arith.constant 0 : index
    %c0_34 = arith.constant 0 : index
    %27 = vector.load %arg2[%c0_32, %c5, %c0_33, %c0_34] : memref<1x19x8x8xf32, #tpu.memory_space<vmem>>, vector<1x1x8x8xf32>
    %28 = vector.shape_cast %27 : vector<1x1x8x8xf32> to vector<8x8xf32>
    %cst_35 = arith.constant dense<0.000000e+00> : vector<16x8xf32>
    %29 = tpu.matmul %3, %28, %cst_35 {dimension_numbers = #tpu.dot_dimension_numbers<[1], [0], [0], [1], [0, 0, 1, 1], [], []>} : vector<16x8xf32>, vector<8x8xf32>, vector<16x8xf32> -> vector<16x8xf32>
    %cst_36 = arith.constant dense<0.000000e+00> : vector<16x16xf32>
    %30 = tpu.matmul %29, %4, %cst_36 {dimension_numbers = #tpu.dot_dimension_numbers<[1], [0], [0], [1], [0, 0, 1, 1], [], []>} : vector<16x8xf32>, vector<8x16xf32>, vector<16x16xf32> -> vector<16x16xf32>
    %c0_37 = arith.constant 0 : index
    %c6 = arith.constant 6 : index
    %c0_38 = arith.constant 0 : index
    %c0_39 = arith.constant 0 : index
    %31 = vector.load %arg2[%c0_37, %c6, %c0_38, %c0_39] : memref<1x19x8x8xf32, #tpu.memory_space<vmem>>, vector<1x1x8x8xf32>
    %32 = vector.shape_cast %31 : vector<1x1x8x8xf32> to vector<8x8xf32>
    %cst_40 = arith.constant dense<0.000000e+00> : vector<16x8xf32>
    %33 = tpu.matmul %3, %32, %cst_40 {dimension_numbers = #tpu.dot_dimension_numbers<[1], [0], [0], [1], [0, 0, 1, 1], [], []>} : vector<16x8xf32>, vector<8x8xf32>, vector<16x8xf32> -> vector<16x8xf32>
    %cst_41 = arith.constant dense<0.000000e+00> : vector<16x16xf32>
    %34 = tpu.matmul %33, %4, %cst_41 {dimension_numbers = #tpu.dot_dimension_numbers<[1], [0], [0], [1], [0, 0, 1, 1], [], []>} : vector<16x8xf32>, vector<8x16xf32>, vector<16x16xf32> -> vector<16x16xf32>
    %c0_42 = arith.constant 0 : index
    %c7 = arith.constant 7 : index
    %c0_43 = arith.constant 0 : index
    %c0_44 = arith.constant 0 : index
    %35 = vector.load %arg2[%c0_42, %c7, %c0_43, %c0_44] : memref<1x19x8x8xf32, #tpu.memory_space<vmem>>, vector<1x1x8x8xf32>
    %36 = vector.shape_cast %35 : vector<1x1x8x8xf32> to vector<8x8xf32>
    %cst_45 = arith.constant dense<0.000000e+00> : vector<16x8xf32>
    %37 = tpu.matmul %3, %36, %cst_45 {dimension_numbers = #tpu.dot_dimension_numbers<[1], [0], [0], [1], [0, 0, 1, 1], [], []>} : vector<16x8xf32>, vector<8x8xf32>, vector<16x8xf32> -> vector<16x8xf32>
    %cst_46 = arith.constant dense<0.000000e+00> : vector<16x16xf32>
    %38 = tpu.matmul %37, %4, %cst_46 {dimension_numbers = #tpu.dot_dimension_numbers<[1], [0], [0], [1], [0, 0, 1, 1], [], []>} : vector<16x8xf32>, vector<8x16xf32>, vector<16x16xf32> -> vector<16x16xf32>
    %c0_47 = arith.constant 0 : index
    %c8 = arith.constant 8 : index
    %c0_48 = arith.constant 0 : index
    %c0_49 = arith.constant 0 : index
    %39 = vector.load %arg2[%c0_47, %c8, %c0_48, %c0_49] : memref<1x19x8x8xf32, #tpu.memory_space<vmem>>, vector<1x1x8x8xf32>
    %40 = vector.shape_cast %39 : vector<1x1x8x8xf32> to vector<8x8xf32>
    %cst_50 = arith.constant dense<0.000000e+00> : vector<16x8xf32>
    %41 = tpu.matmul %3, %40, %cst_50 {dimension_numbers = #tpu.dot_dimension_numbers<[1], [0], [0], [1], [0, 0, 1, 1], [], []>} : vector<16x8xf32>, vector<8x8xf32>, vector<16x8xf32> -> vector<16x8xf32>
    %cst_51 = arith.constant dense<0.000000e+00> : vector<16x16xf32>
    %42 = tpu.matmul %41, %4, %cst_51 {dimension_numbers = #tpu.dot_dimension_numbers<[1], [0], [0], [1], [0, 0, 1, 1], [], []>} : vector<16x8xf32>, vector<8x16xf32>, vector<16x16xf32> -> vector<16x16xf32>
    %c0_52 = arith.constant 0 : index
    %c9 = arith.constant 9 : index
    %c0_53 = arith.constant 0 : index
    %c0_54 = arith.constant 0 : index
    %43 = vector.load %arg2[%c0_52, %c9, %c0_53, %c0_54] : memref<1x19x8x8xf32, #tpu.memory_space<vmem>>, vector<1x1x8x8xf32>
    %44 = vector.shape_cast %43 : vector<1x1x8x8xf32> to vector<8x8xf32>
    %cst_55 = arith.constant dense<0.000000e+00> : vector<16x8xf32>
    %45 = tpu.matmul %3, %44, %cst_55 {dimension_numbers = #tpu.dot_dimension_numbers<[1], [0], [0], [1], [0, 0, 1, 1], [], []>} : vector<16x8xf32>, vector<8x8xf32>, vector<16x8xf32> -> vector<16x8xf32>
    %cst_56 = arith.constant dense<0.000000e+00> : vector<16x16xf32>
    %46 = tpu.matmul %45, %4, %cst_56 {dimension_numbers = #tpu.dot_dimension_numbers<[1], [0], [0], [1], [0, 0, 1, 1], [], []>} : vector<16x8xf32>, vector<8x16xf32>, vector<16x16xf32> -> vector<16x16xf32>
    %c0_57 = arith.constant 0 : index
    %c10 = arith.constant 10 : index
    %c0_58 = arith.constant 0 : index
    %c0_59 = arith.constant 0 : index
    %47 = vector.load %arg2[%c0_57, %c10, %c0_58, %c0_59] : memref<1x19x8x8xf32, #tpu.memory_space<vmem>>, vector<1x1x8x8xf32>
    %48 = vector.shape_cast %47 : vector<1x1x8x8xf32> to vector<8x8xf32>
    %cst_60 = arith.constant dense<0.000000e+00> : vector<16x8xf32>
    %49 = tpu.matmul %3, %48, %cst_60 {dimension_numbers = #tpu.dot_dimension_numbers<[1], [0], [0], [1], [0, 0, 1, 1], [], []>} : vector<16x8xf32>, vector<8x8xf32>, vector<16x8xf32> -> vector<16x8xf32>
    %cst_61 = arith.constant dense<0.000000e+00> : vector<16x16xf32>
    %50 = tpu.matmul %49, %4, %cst_61 {dimension_numbers = #tpu.dot_dimension_numbers<[1], [0], [0], [1], [0, 0, 1, 1], [], []>} : vector<16x8xf32>, vector<8x16xf32>, vector<16x16xf32> -> vector<16x16xf32>
    %c0_62 = arith.constant 0 : index
    %c11 = arith.constant 11 : index
    %c0_63 = arith.constant 0 : index
    %c0_64 = arith.constant 0 : index
    %51 = vector.load %arg2[%c0_62, %c11, %c0_63, %c0_64] : memref<1x19x8x8xf32, #tpu.memory_space<vmem>>, vector<1x1x8x8xf32>
    %52 = vector.shape_cast %51 : vector<1x1x8x8xf32> to vector<8x8xf32>
    %cst_65 = arith.constant dense<0.000000e+00> : vector<16x8xf32>
    %53 = tpu.matmul %3, %52, %cst_65 {dimension_numbers = #tpu.dot_dimension_numbers<[1], [0], [0], [1], [0, 0, 1, 1], [], []>} : vector<16x8xf32>, vector<8x8xf32>, vector<16x8xf32> -> vector<16x8xf32>
    %cst_66 = arith.constant dense<0.000000e+00> : vector<16x16xf32>
    %54 = tpu.matmul %53, %4, %cst_66 {dimension_numbers = #tpu.dot_dimension_numbers<[1], [0], [0], [1], [0, 0, 1, 1], [], []>} : vector<16x8xf32>, vector<8x16xf32>, vector<16x16xf32> -> vector<16x16xf32>
    %c0_67 = arith.constant 0 : index
    %c12 = arith.constant 12 : index
    %c0_68 = arith.constant 0 : index
    %c0_69 = arith.constant 0 : index
    %55 = vector.load %arg2[%c0_67, %c12, %c0_68, %c0_69] : memref<1x19x8x8xf32, #tpu.memory_space<vmem>>, vector<1x1x8x8xf32>
    %56 = vector.shape_cast %55 : vector<1x1x8x8xf32> to vector<8x8xf32>
    %cst_70 = arith.constant dense<0.000000e+00> : vector<16x8xf32>
    %57 = tpu.matmul %3, %56, %cst_70 {dimension_numbers = #tpu.dot_dimension_numbers<[1], [0], [0], [1], [0, 0, 1, 1], [], []>} : vector<16x8xf32>, vector<8x8xf32>, vector<16x8xf32> -> vector<16x8xf32>
    %cst_71 = arith.constant dense<0.000000e+00> : vector<16x16xf32>
    %58 = tpu.matmul %57, %4, %cst_71 {dimension_numbers = #tpu.dot_dimension_numbers<[1], [0], [0], [1], [0, 0, 1, 1], [], []>} : vector<16x8xf32>, vector<8x16xf32>, vector<16x16xf32> -> vector<16x16xf32>
    %c0_72 = arith.constant 0 : index
    %c13 = arith.constant 13 : index
    %c0_73 = arith.constant 0 : index
    %c0_74 = arith.constant 0 : index
    %59 = vector.load %arg2[%c0_72, %c13, %c0_73, %c0_74] : memref<1x19x8x8xf32, #tpu.memory_space<vmem>>, vector<1x1x8x8xf32>
    %60 = vector.shape_cast %59 : vector<1x1x8x8xf32> to vector<8x8xf32>
    %cst_75 = arith.constant dense<0.000000e+00> : vector<16x8xf32>
    %61 = tpu.matmul %3, %60, %cst_75 {dimension_numbers = #tpu.dot_dimension_numbers<[1], [0], [0], [1], [0, 0, 1, 1], [], []>} : vector<16x8xf32>, vector<8x8xf32>, vector<16x8xf32> -> vector<16x8xf32>
    %cst_76 = arith.constant dense<0.000000e+00> : vector<16x16xf32>
    %62 = tpu.matmul %61, %4, %cst_76 {dimension_numbers = #tpu.dot_dimension_numbers<[1], [0], [0], [1], [0, 0, 1, 1], [], []>} : vector<16x8xf32>, vector<8x16xf32>, vector<16x16xf32> -> vector<16x16xf32>
    %c0_77 = arith.constant 0 : index
    %c14 = arith.constant 14 : index
    %c0_78 = arith.constant 0 : index
    %c0_79 = arith.constant 0 : index
    %63 = vector.load %arg2[%c0_77, %c14, %c0_78, %c0_79] : memref<1x19x8x8xf32, #tpu.memory_space<vmem>>, vector<1x1x8x8xf32>
    %64 = vector.shape_cast %63 : vector<1x1x8x8xf32> to vector<8x8xf32>
    %cst_80 = arith.constant dense<0.000000e+00> : vector<16x8xf32>
    %65 = tpu.matmul %3, %64, %cst_80 {dimension_numbers = #tpu.dot_dimension_numbers<[1], [0], [0], [1], [0, 0, 1, 1], [], []>} : vector<16x8xf32>, vector<8x8xf32>, vector<16x8xf32> -> vector<16x8xf32>
    %cst_81 = arith.constant dense<0.000000e+00> : vector<16x16xf32>
    %66 = tpu.matmul %65, %4, %cst_81 {dimension_numbers = #tpu.dot_dimension_numbers<[1], [0], [0], [1], [0, 0, 1, 1], [], []>} : vector<16x8xf32>, vector<8x16xf32>, vector<16x16xf32> -> vector<16x16xf32>
    %c0_82 = arith.constant 0 : index
    %c15 = arith.constant 15 : index
    %c0_83 = arith.constant 0 : index
    %c0_84 = arith.constant 0 : index
    %67 = vector.load %arg2[%c0_82, %c15, %c0_83, %c0_84] : memref<1x19x8x8xf32, #tpu.memory_space<vmem>>, vector<1x1x8x8xf32>
    %68 = vector.shape_cast %67 : vector<1x1x8x8xf32> to vector<8x8xf32>
    %cst_85 = arith.constant dense<0.000000e+00> : vector<16x8xf32>
    %69 = tpu.matmul %3, %68, %cst_85 {dimension_numbers = #tpu.dot_dimension_numbers<[1], [0], [0], [1], [0, 0, 1, 1], [], []>} : vector<16x8xf32>, vector<8x8xf32>, vector<16x8xf32> -> vector<16x8xf32>
    %cst_86 = arith.constant dense<0.000000e+00> : vector<16x16xf32>
    %70 = tpu.matmul %69, %4, %cst_86 {dimension_numbers = #tpu.dot_dimension_numbers<[1], [0], [0], [1], [0, 0, 1, 1], [], []>} : vector<16x8xf32>, vector<8x16xf32>, vector<16x16xf32> -> vector<16x16xf32>
    %c0_87 = arith.constant 0 : index
    %c16 = arith.constant 16 : index
    %c0_88 = arith.constant 0 : index
    %c0_89 = arith.constant 0 : index
    %71 = vector.load %arg2[%c0_87, %c16, %c0_88, %c0_89] : memref<1x19x8x8xf32, #tpu.memory_space<vmem>>, vector<1x1x8x8xf32>
    %72 = vector.shape_cast %71 : vector<1x1x8x8xf32> to vector<8x8xf32>
    %cst_90 = arith.constant dense<0.000000e+00> : vector<16x8xf32>
    %73 = tpu.matmul %3, %72, %cst_90 {dimension_numbers = #tpu.dot_dimension_numbers<[1], [0], [0], [1], [0, 0, 1, 1], [], []>} : vector<16x8xf32>, vector<8x8xf32>, vector<16x8xf32> -> vector<16x8xf32>
    %cst_91 = arith.constant dense<0.000000e+00> : vector<16x16xf32>
    %74 = tpu.matmul %73, %4, %cst_91 {dimension_numbers = #tpu.dot_dimension_numbers<[1], [0], [0], [1], [0, 0, 1, 1], [], []>} : vector<16x8xf32>, vector<8x16xf32>, vector<16x16xf32> -> vector<16x16xf32>
    %c0_92 = arith.constant 0 : index
    %c17 = arith.constant 17 : index
    %c0_93 = arith.constant 0 : index
    %c0_94 = arith.constant 0 : index
    %75 = vector.load %arg2[%c0_92, %c17, %c0_93, %c0_94] : memref<1x19x8x8xf32, #tpu.memory_space<vmem>>, vector<1x1x8x8xf32>
    %76 = vector.shape_cast %75 : vector<1x1x8x8xf32> to vector<8x8xf32>
    %cst_95 = arith.constant dense<0.000000e+00> : vector<16x8xf32>
    %77 = tpu.matmul %3, %76, %cst_95 {dimension_numbers = #tpu.dot_dimension_numbers<[1], [0], [0], [1], [0, 0, 1, 1], [], []>} : vector<16x8xf32>, vector<8x8xf32>, vector<16x8xf32> -> vector<16x8xf32>
    %cst_96 = arith.constant dense<0.000000e+00> : vector<16x16xf32>
    %78 = tpu.matmul %77, %4, %cst_96 {dimension_numbers = #tpu.dot_dimension_numbers<[1], [0], [0], [1], [0, 0, 1, 1], [], []>} : vector<16x8xf32>, vector<8x16xf32>, vector<16x16xf32> -> vector<16x16xf32>
    %c0_97 = arith.constant 0 : index
    %c18 = arith.constant 18 : index
    %c0_98 = arith.constant 0 : index
    %c0_99 = arith.constant 0 : index
    %79 = vector.load %arg2[%c0_97, %c18, %c0_98, %c0_99] : memref<1x19x8x8xf32, #tpu.memory_space<vmem>>, vector<1x1x8x8xf32>
    %80 = vector.shape_cast %79 : vector<1x1x8x8xf32> to vector<8x8xf32>
    %cst_100 = arith.constant dense<0.000000e+00> : vector<16x8xf32>
    %81 = tpu.matmul %3, %80, %cst_100 {dimension_numbers = #tpu.dot_dimension_numbers<[1], [0], [0], [1], [0, 0, 1, 1], [], []>} : vector<16x8xf32>, vector<8x8xf32>, vector<16x8xf32> -> vector<16x8xf32>
    %cst_101 = arith.constant dense<0.000000e+00> : vector<16x16xf32>
    %82 = tpu.matmul %81, %4, %cst_101 {dimension_numbers = #tpu.dot_dimension_numbers<[1], [0], [0], [1], [0, 0, 1, 1], [], []>} : vector<16x8xf32>, vector<8x16xf32>, vector<16x16xf32> -> vector<16x16xf32>
    %83 = arith.maximumf %10, %14 : vector<16x16xf32>
    %84 = arith.maximumf %83, %18 : vector<16x16xf32>
    %85 = arith.maximumf %84, %22 : vector<16x16xf32>
    %86 = arith.maximumf %85, %26 : vector<16x16xf32>
    %87 = arith.maximumf %86, %30 : vector<16x16xf32>
    %88 = arith.maximumf %87, %34 : vector<16x16xf32>
    %89 = arith.maximumf %88, %38 : vector<16x16xf32>
    %90 = arith.maximumf %89, %42 : vector<16x16xf32>
    %91 = arith.maximumf %90, %46 : vector<16x16xf32>
    %92 = arith.maximumf %91, %50 : vector<16x16xf32>
    %93 = arith.maximumf %92, %54 : vector<16x16xf32>
    %94 = arith.maximumf %93, %58 : vector<16x16xf32>
    %95 = arith.maximumf %94, %62 : vector<16x16xf32>
    %96 = arith.maximumf %95, %66 : vector<16x16xf32>
    %97 = arith.maximumf %96, %70 : vector<16x16xf32>
    %98 = arith.maximumf %97, %74 : vector<16x16xf32>
    %99 = arith.maximumf %98, %78 : vector<16x16xf32>
    %100 = arith.maximumf %99, %82 : vector<16x16xf32>
    %cst_102 = arith.constant 0.000000e+00 : f32
    %101 = vector.broadcast %cst_102 : f32 to vector<16x16xf32>
    %cst_103 = arith.constant 0.000000e+00 : f32
    %102 = vector.broadcast %cst_103 : f32 to vector<16x16xf32>
    %cst_104 = arith.constant 0.000000e+00 : f32
    %103 = vector.broadcast %cst_104 : f32 to vector<16x16xf32>
    %104 = arith.subf %10, %100 : vector<16x16xf32>
    %105 = math.exp %104 : vector<16x16xf32>
    %106 = arith.addf %101, %105 : vector<16x16xf32>
    %c0_i32_105 = arith.constant 0 : i32
    %107 = vector.broadcast %c0_i32_105 : i32 to vector<16x16xi32>
    %108 = arith.cmpi eq, %6, %107 : vector<16x16xi32>
    %109 = arith.extui %108 : vector<16x16xi1> to vector<16x16xi32>
    %110 = arith.sitofp %109 : vector<16x16xi32> to vector<16x16xf32>
    %111 = arith.mulf %110, %10 : vector<16x16xf32>
    %112 = arith.addf %102, %111 : vector<16x16xf32>
    %cst_106 = arith.constant 8.373000e-01 : f32
    %113 = vector.broadcast %cst_106 : f32 to vector<16x16xf32>
    %114 = arith.mulf %110, %113 : vector<16x16xf32>
    %115 = arith.addf %103, %114 : vector<16x16xf32>
    %116 = arith.subf %14, %100 : vector<16x16xf32>
    %117 = math.exp %116 : vector<16x16xf32>
    %118 = arith.addf %106, %117 : vector<16x16xf32>
    %c1_i32 = arith.constant 1 : i32
    %119 = vector.broadcast %c1_i32 : i32 to vector<16x16xi32>
    %120 = arith.cmpi eq, %6, %119 : vector<16x16xi32>
    %121 = arith.extui %120 : vector<16x16xi1> to vector<16x16xi32>
    %122 = arith.sitofp %121 : vector<16x16xi32> to vector<16x16xf32>
    %123 = arith.mulf %122, %14 : vector<16x16xf32>
    %124 = arith.addf %112, %123 : vector<16x16xf32>
    %cst_107 = arith.constant 9.180000e-01 : f32
    %125 = vector.broadcast %cst_107 : f32 to vector<16x16xf32>
    %126 = arith.mulf %122, %125 : vector<16x16xf32>
    %127 = arith.addf %115, %126 : vector<16x16xf32>
    %128 = arith.subf %18, %100 : vector<16x16xf32>
    %129 = math.exp %128 : vector<16x16xf32>
    %130 = arith.addf %118, %129 : vector<16x16xf32>
    %c2_i32 = arith.constant 2 : i32
    %131 = vector.broadcast %c2_i32 : i32 to vector<16x16xi32>
    %132 = arith.cmpi eq, %6, %131 : vector<16x16xi32>
    %133 = arith.extui %132 : vector<16x16xi1> to vector<16x16xi32>
    %134 = arith.sitofp %133 : vector<16x16xi32> to vector<16x16xf32>
    %135 = arith.mulf %134, %18 : vector<16x16xf32>
    %136 = arith.addf %124, %135 : vector<16x16xf32>
    %cst_108 = arith.constant 0.865999996 : f32
    %137 = vector.broadcast %cst_108 : f32 to vector<16x16xf32>
    %138 = arith.mulf %134, %137 : vector<16x16xf32>
    %139 = arith.addf %127, %138 : vector<16x16xf32>
    %140 = arith.subf %22, %100 : vector<16x16xf32>
    %141 = math.exp %140 : vector<16x16xf32>
    %142 = arith.addf %130, %141 : vector<16x16xf32>
    %c3_i32 = arith.constant 3 : i32
    %143 = vector.broadcast %c3_i32 : i32 to vector<16x16xi32>
    %144 = arith.cmpi eq, %6, %143 : vector<16x16xi32>
    %145 = arith.extui %144 : vector<16x16xi1> to vector<16x16xi32>
    %146 = arith.sitofp %145 : vector<16x16xi32> to vector<16x16xf32>
    %147 = arith.mulf %146, %22 : vector<16x16xf32>
    %148 = arith.addf %136, %147 : vector<16x16xf32>
    %cst_109 = arith.constant 1.034500e+00 : f32
    %149 = vector.broadcast %cst_109 : f32 to vector<16x16xf32>
    %150 = arith.mulf %146, %149 : vector<16x16xf32>
    %151 = arith.addf %139, %150 : vector<16x16xf32>
    %152 = arith.subf %26, %100 : vector<16x16xf32>
    %153 = math.exp %152 : vector<16x16xf32>
    %154 = arith.addf %142, %153 : vector<16x16xf32>
    %c4_i32 = arith.constant 4 : i32
    %155 = vector.broadcast %c4_i32 : i32 to vector<16x16xi32>
    %156 = arith.cmpi eq, %6, %155 : vector<16x16xi32>
    %157 = arith.extui %156 : vector<16x16xi1> to vector<16x16xi32>
    %158 = arith.sitofp %157 : vector<16x16xi32> to vector<16x16xf32>
    %159 = arith.mulf %158, %26 : vector<16x16xf32>
    %160 = arith.addf %148, %159 : vector<16x16xf32>
    %cst_110 = arith.constant 1.016600e+00 : f32
    %161 = vector.broadcast %cst_110 : f32 to vector<16x16xf32>
    %162 = arith.mulf %158, %161 : vector<16x16xf32>
    %163 = arith.addf %151, %162 : vector<16x16xf32>
    %164 = arith.subf %30, %100 : vector<16x16xf32>
    %165 = math.exp %164 : vector<16x16xf32>
    %166 = arith.addf %154, %165 : vector<16x16xf32>
    %c5_i32 = arith.constant 5 : i32
    %167 = vector.broadcast %c5_i32 : i32 to vector<16x16xi32>
    %168 = arith.cmpi eq, %6, %167 : vector<16x16xi32>
    %169 = arith.extui %168 : vector<16x16xi1> to vector<16x16xi32>
    %170 = arith.sitofp %169 : vector<16x16xi32> to vector<16x16xf32>
    %171 = arith.mulf %170, %30 : vector<16x16xf32>
    %172 = arith.addf %160, %171 : vector<16x16xf32>
    %cst_111 = arith.constant 9.969000e-01 : f32
    %173 = vector.broadcast %cst_111 : f32 to vector<16x16xf32>
    %174 = arith.mulf %170, %173 : vector<16x16xf32>
    %175 = arith.addf %163, %174 : vector<16x16xf32>
    %176 = arith.subf %34, %100 : vector<16x16xf32>
    %177 = math.exp %176 : vector<16x16xf32>
    %178 = arith.addf %166, %177 : vector<16x16xf32>
    %c6_i32 = arith.constant 6 : i32
    %179 = vector.broadcast %c6_i32 : i32 to vector<16x16xi32>
    %180 = arith.cmpi eq, %6, %179 : vector<16x16xi32>
    %181 = arith.extui %180 : vector<16x16xi1> to vector<16x16xi32>
    %182 = arith.sitofp %181 : vector<16x16xi32> to vector<16x16xf32>
    %183 = arith.mulf %182, %34 : vector<16x16xf32>
    %184 = arith.addf %172, %183 : vector<16x16xf32>
    %cst_112 = arith.constant 0.975399971 : f32
    %185 = vector.broadcast %cst_112 : f32 to vector<16x16xf32>
    %186 = arith.mulf %182, %185 : vector<16x16xf32>
    %187 = arith.addf %175, %186 : vector<16x16xf32>
    %188 = arith.subf %38, %100 : vector<16x16xf32>
    %189 = math.exp %188 : vector<16x16xf32>
    %190 = arith.addf %178, %189 : vector<16x16xf32>
    %c7_i32 = arith.constant 7 : i32
    %191 = vector.broadcast %c7_i32 : i32 to vector<16x16xi32>
    %192 = arith.cmpi eq, %6, %191 : vector<16x16xi32>
    %193 = arith.extui %192 : vector<16x16xi1> to vector<16x16xi32>
    %194 = arith.sitofp %193 : vector<16x16xi32> to vector<16x16xf32>
    %195 = arith.mulf %194, %38 : vector<16x16xf32>
    %196 = arith.addf %184, %195 : vector<16x16xf32>
    %cst_113 = arith.constant 1.048900e+00 : f32
    %197 = vector.broadcast %cst_113 : f32 to vector<16x16xf32>
    %198 = arith.mulf %194, %197 : vector<16x16xf32>
    %199 = arith.addf %187, %198 : vector<16x16xf32>
    %200 = arith.subf %42, %100 : vector<16x16xf32>
    %201 = math.exp %200 : vector<16x16xf32>
    %202 = arith.addf %190, %201 : vector<16x16xf32>
    %c8_i32 = arith.constant 8 : i32
    %203 = vector.broadcast %c8_i32 : i32 to vector<16x16xi32>
    %204 = arith.cmpi eq, %6, %203 : vector<16x16xi32>
    %205 = arith.extui %204 : vector<16x16xi1> to vector<16x16xi32>
    %206 = arith.sitofp %205 : vector<16x16xi32> to vector<16x16xf32>
    %207 = arith.mulf %206, %42 : vector<16x16xf32>
    %208 = arith.addf %196, %207 : vector<16x16xf32>
    %cst_114 = arith.constant 8.786000e-01 : f32
    %209 = vector.broadcast %cst_114 : f32 to vector<16x16xf32>
    %210 = arith.mulf %206, %209 : vector<16x16xf32>
    %211 = arith.addf %199, %210 : vector<16x16xf32>
    %212 = arith.subf %46, %100 : vector<16x16xf32>
    %213 = math.exp %212 : vector<16x16xf32>
    %214 = arith.addf %202, %213 : vector<16x16xf32>
    %c9_i32 = arith.constant 9 : i32
    %215 = vector.broadcast %c9_i32 : i32 to vector<16x16xi32>
    %216 = arith.cmpi eq, %6, %215 : vector<16x16xi32>
    %217 = arith.extui %216 : vector<16x16xi1> to vector<16x16xi32>
    %218 = arith.sitofp %217 : vector<16x16xi32> to vector<16x16xf32>
    %219 = arith.mulf %218, %46 : vector<16x16xf32>
    %220 = arith.addf %208, %219 : vector<16x16xf32>
    %cst_115 = arith.constant 1.002300e+00 : f32
    %221 = vector.broadcast %cst_115 : f32 to vector<16x16xf32>
    %222 = arith.mulf %218, %221 : vector<16x16xf32>
    %223 = arith.addf %211, %222 : vector<16x16xf32>
    %224 = arith.subf %50, %100 : vector<16x16xf32>
    %225 = math.exp %224 : vector<16x16xf32>
    %226 = arith.addf %214, %225 : vector<16x16xf32>
    %c10_i32 = arith.constant 10 : i32
    %227 = vector.broadcast %c10_i32 : i32 to vector<16x16xi32>
    %228 = arith.cmpi eq, %6, %227 : vector<16x16xi32>
    %229 = arith.extui %228 : vector<16x16xi1> to vector<16x16xi32>
    %230 = arith.sitofp %229 : vector<16x16xi32> to vector<16x16xf32>
    %231 = arith.mulf %230, %50 : vector<16x16xf32>
    %232 = arith.addf %220, %231 : vector<16x16xf32>
    %cst_116 = arith.constant 0.953899979 : f32
    %233 = vector.broadcast %cst_116 : f32 to vector<16x16xf32>
    %234 = arith.mulf %230, %233 : vector<16x16xf32>
    %235 = arith.addf %223, %234 : vector<16x16xf32>
    %236 = arith.subf %54, %100 : vector<16x16xf32>
    %237 = math.exp %236 : vector<16x16xf32>
    %238 = arith.addf %226, %237 : vector<16x16xf32>
    %c11_i32 = arith.constant 11 : i32
    %239 = vector.broadcast %c11_i32 : i32 to vector<16x16xi32>
    %240 = arith.cmpi eq, %6, %239 : vector<16x16xi32>
    %241 = arith.extui %240 : vector<16x16xi1> to vector<16x16xi32>
    %242 = arith.sitofp %241 : vector<16x16xi32> to vector<16x16xf32>
    %243 = arith.mulf %242, %54 : vector<16x16xf32>
    %244 = arith.addf %232, %243 : vector<16x16xf32>
    %cst_117 = arith.constant 9.843000e-01 : f32
    %245 = vector.broadcast %cst_117 : f32 to vector<16x16xf32>
    %246 = arith.mulf %242, %245 : vector<16x16xf32>
    %247 = arith.addf %235, %246 : vector<16x16xf32>
    %248 = arith.subf %58, %100 : vector<16x16xf32>
    %249 = math.exp %248 : vector<16x16xf32>
    %250 = arith.addf %238, %249 : vector<16x16xf32>
    %c12_i32 = arith.constant 12 : i32
    %251 = vector.broadcast %c12_i32 : i32 to vector<16x16xi32>
    %252 = arith.cmpi eq, %6, %251 : vector<16x16xi32>
    %253 = arith.extui %252 : vector<16x16xi1> to vector<16x16xi32>
    %254 = arith.sitofp %253 : vector<16x16xi32> to vector<16x16xf32>
    %255 = arith.mulf %254, %58 : vector<16x16xf32>
    %256 = arith.addf %244, %255 : vector<16x16xf32>
    %cst_118 = arith.constant 1.111600e+00 : f32
    %257 = vector.broadcast %cst_118 : f32 to vector<16x16xf32>
    %258 = arith.mulf %254, %257 : vector<16x16xf32>
    %259 = arith.addf %247, %258 : vector<16x16xf32>
    %260 = arith.subf %62, %100 : vector<16x16xf32>
    %261 = math.exp %260 : vector<16x16xf32>
    %262 = arith.addf %250, %261 : vector<16x16xf32>
    %c13_i32 = arith.constant 13 : i32
    %263 = vector.broadcast %c13_i32 : i32 to vector<16x16xi32>
    %264 = arith.cmpi eq, %6, %263 : vector<16x16xi32>
    %265 = arith.extui %264 : vector<16x16xi1> to vector<16x16xi32>
    %266 = arith.sitofp %265 : vector<16x16xi32> to vector<16x16xf32>
    %267 = arith.mulf %266, %62 : vector<16x16xf32>
    %268 = arith.addf %256, %267 : vector<16x16xf32>
    %cst_119 = arith.constant 0.903699994 : f32
    %269 = vector.broadcast %cst_119 : f32 to vector<16x16xf32>
    %270 = arith.mulf %266, %269 : vector<16x16xf32>
    %271 = arith.addf %259, %270 : vector<16x16xf32>
    %272 = arith.subf %66, %100 : vector<16x16xf32>
    %273 = math.exp %272 : vector<16x16xf32>
    %274 = arith.addf %262, %273 : vector<16x16xf32>
    %c14_i32 = arith.constant 14 : i32
    %275 = vector.broadcast %c14_i32 : i32 to vector<16x16xi32>
    %276 = arith.cmpi eq, %6, %275 : vector<16x16xi32>
    %277 = arith.extui %276 : vector<16x16xi1> to vector<16x16xi32>
    %278 = arith.sitofp %277 : vector<16x16xi32> to vector<16x16xf32>
    %279 = arith.mulf %278, %66 : vector<16x16xf32>
    %280 = arith.addf %268, %279 : vector<16x16xf32>
    %cst_120 = arith.constant 1.086500e+00 : f32
    %281 = vector.broadcast %cst_120 : f32 to vector<16x16xf32>
    %282 = arith.mulf %278, %281 : vector<16x16xf32>
    %283 = arith.addf %271, %282 : vector<16x16xf32>
    %284 = arith.subf %70, %100 : vector<16x16xf32>
    %285 = math.exp %284 : vector<16x16xf32>
    %286 = arith.addf %274, %285 : vector<16x16xf32>
    %c15_i32 = arith.constant 15 : i32
    %287 = vector.broadcast %c15_i32 : i32 to vector<16x16xi32>
    %288 = arith.cmpi eq, %6, %287 : vector<16x16xi32>
    %289 = arith.extui %288 : vector<16x16xi1> to vector<16x16xi32>
    %290 = arith.sitofp %289 : vector<16x16xi32> to vector<16x16xf32>
    %291 = arith.mulf %290, %70 : vector<16x16xf32>
    %292 = arith.addf %280, %291 : vector<16x16xf32>
    %cst_121 = arith.constant 1.095500e+00 : f32
    %293 = vector.broadcast %cst_121 : f32 to vector<16x16xf32>
    %294 = arith.mulf %290, %293 : vector<16x16xf32>
    %295 = arith.addf %283, %294 : vector<16x16xf32>
    %296 = arith.subf %74, %100 : vector<16x16xf32>
    %297 = math.exp %296 : vector<16x16xf32>
    %298 = arith.addf %286, %297 : vector<16x16xf32>
    %c16_i32 = arith.constant 16 : i32
    %299 = vector.broadcast %c16_i32 : i32 to vector<16x16xi32>
    %300 = arith.cmpi eq, %6, %299 : vector<16x16xi32>
    %301 = arith.extui %300 : vector<16x16xi1> to vector<16x16xi32>
    %302 = arith.sitofp %301 : vector<16x16xi32> to vector<16x16xf32>
    %303 = arith.mulf %302, %74 : vector<16x16xf32>
    %304 = arith.addf %292, %303 : vector<16x16xf32>
    %cst_122 = arith.constant 1.086500e+00 : f32
    %305 = vector.broadcast %cst_122 : f32 to vector<16x16xf32>
    %306 = arith.mulf %302, %305 : vector<16x16xf32>
    %307 = arith.addf %295, %306 : vector<16x16xf32>
    %308 = arith.subf %78, %100 : vector<16x16xf32>
    %309 = math.exp %308 : vector<16x16xf32>
    %310 = arith.addf %298, %309 : vector<16x16xf32>
    %c17_i32 = arith.constant 17 : i32
    %311 = vector.broadcast %c17_i32 : i32 to vector<16x16xi32>
    %312 = arith.cmpi eq, %6, %311 : vector<16x16xi32>
    %313 = arith.extui %312 : vector<16x16xi1> to vector<16x16xi32>
    %314 = arith.sitofp %313 : vector<16x16xi32> to vector<16x16xf32>
    %315 = arith.mulf %314, %78 : vector<16x16xf32>
    %316 = arith.addf %304, %315 : vector<16x16xf32>
    %cst_123 = arith.constant 1.152900e+00 : f32
    %317 = vector.broadcast %cst_123 : f32 to vector<16x16xf32>
    %318 = arith.mulf %314, %317 : vector<16x16xf32>
    %319 = arith.addf %307, %318 : vector<16x16xf32>
    %320 = arith.subf %82, %100 : vector<16x16xf32>
    %321 = math.exp %320 : vector<16x16xf32>
    %322 = arith.addf %310, %321 : vector<16x16xf32>
    %c18_i32 = arith.constant 18 : i32
    %323 = vector.broadcast %c18_i32 : i32 to vector<16x16xi32>
    %324 = arith.cmpi eq, %6, %323 : vector<16x16xi32>
    %325 = arith.extui %324 : vector<16x16xi1> to vector<16x16xi32>
    %326 = arith.sitofp %325 : vector<16x16xi32> to vector<16x16xf32>
    %327 = arith.mulf %326, %82 : vector<16x16xf32>
    %328 = arith.addf %316, %327 : vector<16x16xf32>
    %cst_124 = arith.constant 1.050700e+00 : f32
    %329 = vector.broadcast %cst_124 : f32 to vector<16x16xf32>
    %330 = arith.mulf %326, %329 : vector<16x16xf32>
    %331 = arith.addf %319, %330 : vector<16x16xf32>
    %c255_i32 = arith.constant 255 : i32
    %332 = vector.broadcast %c255_i32 : i32 to vector<16x16xi32>
    %333 = arith.cmpi ne, %6, %332 : vector<16x16xi32>
    %334 = arith.extui %333 : vector<16x16xi1> to vector<16x16xi32>
    %335 = arith.sitofp %334 : vector<16x16xi32> to vector<16x16xf32>
    %336 = math.log %322 : vector<16x16xf32>
    %337 = arith.addf %100, %336 : vector<16x16xf32>
    %338 = arith.subf %337, %328 : vector<16x16xf32>
    %339 = arith.mulf %331, %335 : vector<16x16xf32>
    %c0_125 = arith.constant 0 : index
    %c0_126 = arith.constant 0 : index
    %c0_127 = arith.constant 0 : index
    %340 = vector.load %arg6[%c0_125, %c0_126, %c0_127] : memref<1x16x16xf32, #tpu.memory_space<vmem>>, vector<1x16x16xf32>
    %341 = vector.shape_cast %340 : vector<1x16x16xf32> to vector<16x16xf32>
    %342 = arith.mulf %339, %338 : vector<16x16xf32>
    %343 = arith.addf %341, %342 : vector<16x16xf32>
    %c0_128 = arith.constant 0 : index
    %c0_129 = arith.constant 0 : index
    %c0_130 = arith.constant 0 : index
    %344 = vector.load %arg6[%c0_128, %c0_129, %c0_130] : memref<1x16x16xf32, #tpu.memory_space<vmem>>, vector<1x16x16xf32>
    %345 = vector.shape_cast %344 : vector<1x16x16xf32> to vector<16x16xf32>
    %346 = vector.shape_cast %343 : vector<16x16xf32> to vector<1x16x16xf32>
    tpu.vector_store %arg6[%c0_128, %c0_129, %c0_130], %346 {strides = array<i32>} : memref<1x16x16xf32, #tpu.memory_space<vmem>>, vector<1x16x16xf32>,
    %c0_131 = arith.constant 0 : index
    %c0_132 = arith.constant 0 : index
    %c0_133 = arith.constant 0 : index
    %347 = vector.load %arg7[%c0_131, %c0_132, %c0_133] : memref<1x16x16xf32, #tpu.memory_space<vmem>>, vector<1x16x16xf32>
    %348 = vector.shape_cast %347 : vector<1x16x16xf32> to vector<16x16xf32>
    %349 = arith.addf %348, %339 : vector<16x16xf32>
    %c0_134 = arith.constant 0 : index
    %c0_135 = arith.constant 0 : index
    %c0_136 = arith.constant 0 : index
    %350 = vector.load %arg7[%c0_134, %c0_135, %c0_136] : memref<1x16x16xf32, #tpu.memory_space<vmem>>, vector<1x16x16xf32>
    %351 = vector.shape_cast %350 : vector<1x16x16xf32> to vector<16x16xf32>
    %352 = vector.shape_cast %349 : vector<16x16xf32> to vector<1x16x16xf32>
    tpu.vector_store %arg7[%c0_134, %c0_135, %c0_136], %352 {strides = array<i32>} : memref<1x16x16xf32, #tpu.memory_space<vmem>>, vector<1x16x16xf32>,
    return
  }
  func.func @transform_0(%arg0: i32, %arg1: i32) -> (i32, i32, i32, i32) {
    %c0_i32 = arith.constant 0 : i32
    %c0_i32_0 = arith.constant 0 : i32
    %c0_i32_1 = arith.constant 0 : i32
    %c0_i32_2 = arith.constant 0 : i32
    return %arg0, %c0_i32, %c0_i32_0, %c0_i32_1 : i32, i32, i32, i32
  }
  func.func @transform_1(%arg0: i32, %arg1: i32) -> (i32, i32) {
    %c0_i32 = arith.constant 0 : i32
    %c0_i32_0 = arith.constant 0 : i32
    return %arg1, %c0_i32 : i32, i32
  }
  func.func @transform_2(%arg0: i32, %arg1: i32) -> (i32, i32) {
    %c0_i32 = arith.constant 0 : i32
    %c0_i32_0 = arith.constant 0 : i32
    %c0_i32_1 = arith.constant 0 : i32
    return %c0_i32, %c0_i32_0 : i32, i32
  }
  func.func @transform_3(%arg0: i32, %arg1: i32) -> (i32, i32, i32) {
    %c0_i32 = arith.constant 0 : i32
    %c0_i32_0 = arith.constant 0 : i32
    return %arg0, %arg1, %c0_i32 : i32, i32, i32
  }
  func.func @transform_4(%arg0: i32, %arg1: i32) -> (i32, i32, i32) {
    %c0_i32 = arith.constant 0 : i32
    %c0_i32_0 = arith.constant 0 : i32
    %c0_i32_1 = arith.constant 0 : i32
    return %arg0, %c0_i32, %c0_i32_0 : i32, i32, i32
  }
  func.func @transform_5(%arg0: i32, %arg1: i32) -> (i32, i32, i32) {
    %c0_i32 = arith.constant 0 : i32
    %c0_i32_0 = arith.constant 0 : i32
    %c0_i32_1 = arith.constant 0 : i32
    return %arg0, %c0_i32, %c0_i32_0 : i32, i32, i32
  }
}

</mosaic_0001>

<bundles_post_ra>
// kernel: criterion_cross_entropy.1
= control target key start
LH: loop header
LB: loop body
LE: loop exit
PB: predicated region body
PF: predicated region fallthrough
CT: control target
= control target key end

     0   :  { %s4562_s18 = smov 0   ;;  %s4564_s19 = smov 0   ;;  %s5308_s0 = inlined_call_operand.vmem [shape: f32[2,19,8,8], index: 0, kind: input, shape index: {}]   ;;  %s5309_s1 = inlined_call_operand.vmem [shape: f32[16,8], index: 1, kind: input, shape index: {}]   ;;  %s5310_s2 = inlined_call_operand.vmem [shape: f32[8,16], index: 2, kind: input, shape index: {}]   ;;  %s5311_s3 = inlined_call_operand.vmem [shape: s32[2,16,16], index: 3, kind: input, shape index: {}]   ;;  %s5312_s4 = inlined_call_operand.vmem [shape: f32[2,16,16], index: 4, kind: output, shape index: {0}]   ;;  %s5313_s5 = inlined_call_operand.vmem [shape: f32[2,16,16], index: 5, kind: output, shape index: {1}]  }
   0x1   :  { %s4566_s20 = smov 0  }
   0x2 LB: > { %s28_s21 = sadd.s32 1, %s4525_s19  ;;  %p3950_p0 = scmp.ge.s32.totalorder %s4529_s20, 1  ;;  %s4529_s20 = sphi %s4566_s20, %s16_s20   ;;  %s4525_s19 = sphi %s4564_s19, %s5315_s19   ;;  %s4521_s18 = sphi %s4562_s18, %s5314_s18  }
   0x3   : > { %p30_p1 = scmp.ge.s32.totalorder %s28_s21, 2  ;;  %p230_p2 = scmp.lt.s32.totalorder %s4529_s20, 3 }
   0x5   : > { %s5317_s21 = smov (%p30_p1, %s28_s21), 0  ;;  %p231_p3 = pnand %p3950_p0, %p230_p2 }
   0x6   : > { %p277_p4 = scmp.lt.s32.totalorder (!%p231_p3), %s4521_s18, 1 }
   0x7   : > { %234 = sbr.rel (%p231_p3) target bundleno = 581 (0x245), region = 36 }
   0xc   : > { %v4583_v0 = vld [vmem:[%s5309_s1] sm:$0xff]  ;;  %vm323_vm0 = vcmask 64512   ;;  %s5319_s18 = smov (!%p277_p4, %s4521_s18), 1  ;;  %v4599_v2 = vld [vmem:[%s5309_s1 + $0x8] sm:$0xff]  ;;  %vm312_vm3 = vcmask 130048   ;;  %v4531_v61 = vmov 0.0  }
   0xd   : > { %4213 = vmatprep.mubr.msk.f32.mxu0 %vm323_vm0, %v4583_v0  ;;  %s4401_s24 = smul.u32 152, %s5319_s18  ;;  %v4690_v21 = vld [vmem:[%s5310_s2] sm:$0xff]  ;;  %s4094_s7 = sshll.u32 %s5319_s18, 4 }
   0xe   : > { %4216 = vmatprep.subr.mxu1 %v4690_v21  ;;  %s296_s10 = scalar_lea.vmem %s5311_s3, %s4094_s7  ;;  %s4785_s13 = scalar_lea.vmem %s5312_s4, %s4094_s7 }
   0xf   : > { %s4593_s27 = scalar_lea.vmem %s5308_s0, %s4401_s24  ;;  %4217 = vmatpush3.msra.mxu1 %v4690_v21  ;;  %v4778_v60 = vld [vmem:[%s296_s10 + $0x8] sm:$0xff]  ;;  %s4790_s16 = scalar_lea.vmem %s5313_s5, %s4094_s7  ;;  %314 = vst.msk [vmem:[%s4785_s13 + $0x8] sm:$0xff] %vm312_vm3, %v4531_v61  ;;  %313 = vst.msk [vmem:[%s4785_s13] sm:$0xff] %vm312_vm3, %v4531_v61 }
  0x10   : > { %v322_v1 = vld [vmem:[%s4593_s27] sm:$0xff]  ;;  %v3962_v3 = vld [vmem:[%s4593_s27 + $0x8] sm:$0xff]  ;;  %v3967_v4 = vld [vmem:[%s4593_s27 + $0x10] sm:$0xff]  ;;  %4226 = vmatprep.subr.mxu1 %v4690_v21  ;;  %vm3375_vm1 = vcmp.eq.s32.totalorder %v4778_v60, 0  ;;  %vm3397_vm2 = vcmp.eq.s32.totalorder %v4778_v60, 1  ;;  %316 = vst.msk [vmem:[%s4790_s16 + $0x8] sm:$0xff] %vm312_vm3, %v4531_v61 }
  0x11   : > { %4211 = vmatprep.subr.mxu0 %v322_v1  ;;  %v3972_v5 = vld [vmem:[%s4593_s27 + $0x18] sm:$0xff]  ;;  %v3977_v6 = vld [vmem:[%s4593_s27 + $0x20] sm:$0xff]  ;;  %v3982_v7 = vld [vmem:[%s4593_s27 + $0x28] sm:$0xff]  ;;  %315 = vst.msk [vmem:[%s4790_s16] sm:$0xff] %vm312_vm3, %v4531_v61  ;;  %v4805_v62 = vsel %vm3375_vm1, 1.0, %v4531_v61  ;;  %v4808_v63 = vsel %vm3397_vm2, 1.0, %v4531_v61 }
  0x12   : > { %4212 = vmatpush3.msra.mxu0 %v322_v1  ;;  %v3987_v8 = vld [vmem:[%s4593_s27 + $0x30] sm:$0xff]  ;;  %v3992_v9 = vld [vmem:[%s4593_s27 + $0x38] sm:$0xff]  ;;  %v3997_v10 = vld [vmem:[%s4593_s27 + $0x40] sm:$0xff]  ;;  %v3407_v1 = vmul.f32 0.918, %v4808_v63  ;;  %vm3419_vm4 = vcmp.eq.s32.totalorder %v4778_v60, 2 }
  0x13   : > { %4214 = vmatmul.mubr.msk.f32.vlgmr.msra.gmra.mxu0 %vm323_vm0, %v4599_v2  ;;  %4221 = vmatprep.subr.mxu0 %v3962_v3  ;;  %v4002_v11 = vld [vmem:[%s4593_s27 + $0x48] sm:$0xff]  ;;  %v4007_v12 = vld [vmem:[%s4593_s27 + $0x50] sm:$0xff]  ;;  %v4012_v13 = vld [vmem:[%s4593_s27 + $0x58] sm:$0xff]  ;;  %vm3441_vm5 = vcmp.eq.s32.totalorder %v4778_v60, 3  ;;  %vm3463_vm6 = vcmp.eq.s32.totalorder %v4778_v60, 4  ;;  %vm3485_vm7 = vcmp.eq.s32.totalorder %v4778_v60, 5 }
  0x14   : > { %4222 = vmatpush3.msra.mxu0 %v3962_v3  ;;  %4223 = vmatprep.mubr.msk.f32.mxu0 %vm323_vm0, %v4583_v0  ;;  %v4017_v14 = vld [vmem:[%s4593_s27 + $0x60] sm:$0xff]  ;;  %v4022_v15 = vld [vmem:[%s4593_s27 + $0x68] sm:$0xff]  ;;  %v4027_v16 = vld [vmem:[%s4593_s27 + $0x70] sm:$0xff]  ;;  %vm3507_vm10 = vcmp.eq.s32.totalorder %v4778_v60, 6  ;;  %vm3529_vm12 = vcmp.eq.s32.totalorder %v4778_v60, 7  ;;  %vm3551_vm14 = vcmp.eq.s32.totalorder %v4778_v60, 8 }
  0x15   : > { %4231 = vmatprep.subr.mxu0 %v3967_v4  ;;  %v4032_v17 = vld [vmem:[%s4593_s27 + $0x78] sm:$0xff]  ;;  %v4037_v18 = vld [vmem:[%s4593_s27 + $0x80] sm:$0xff]  ;;  %v4042_v19 = vld [vmem:[%s4593_s27 + $0x88] sm:$0xff]  ;;  %vm3595_vm2 = vcmp.eq.s32.totalorder %v4778_v60, 10 }
  0x16   : > { %v4047_v20 = vld [vmem:[%s4593_s27 + $0x90] sm:$0xff] }
  0x17   : > { %4224 = vmatmul.mubr.msk.f32.vlgmr.msra.gmra.mxu0 %vm323_vm0, %v4599_v2 }
  0x18   : > { %4232 = vmatpush3.msra.mxu0 %v3967_v4  ;;  %4233 = vmatprep.mubr.msk.f32.mxu0 %vm323_vm0, %v4583_v0 }
  0x19   : > { %4241 = vmatprep.subr.mxu0 %v3972_v5 }
  0x1b   : > { %4234 = vmatmul.mubr.msk.f32.vlgmr.msra.gmra.mxu0 %vm323_vm0, %v4599_v2 }
  0x1c   : > { %4242 = vmatpush3.msra.mxu0 %v3972_v5  ;;  %4243 = vmatprep.mubr.msk.f32.mxu0 %vm323_vm0, %v4583_v0  ;;  %v4819_v5 = vsel %vm3441_vm5, 1.0, %v4531_v61  ;;  %vm3617_vm5 = vcmp.eq.s32.totalorder %v4778_v60, 11 }
  0x1d   : > { %4251 = vmatprep.subr.mxu0 %v3977_v6 }
  0x1f   : > { %4244 = vmatmul.mubr.msk.f32.vlgmr.msra.gmra.mxu0 %vm323_vm0, %v4599_v2 }
  0x20   : > { %4252 = vmatpush3.msra.mxu0 %v3977_v6  ;;  %4253 = vmatprep.mubr.msk.f32.mxu0 %vm323_vm0, %v4583_v0 }
  0x21   : > { %4261 = vmatprep.subr.mxu0 %v3982_v7 }
  0x23   : > { %4254 = vmatmul.mubr.msk.f32.vlgmr.msra.gmra.mxu0 %vm323_vm0, %v4599_v2 }
  0x24   : > { %4262 = vmatpush3.msra.mxu0 %v3982_v7  ;;  %4263 = vmatprep.mubr.msk.f32.mxu0 %vm323_vm0, %v4583_v0  ;;  %v3451_v7 = vmul.f32 1.0345, %v4819_v5 }
  0x25   : > { %4271 = vmatprep.subr.mxu0 %v3987_v8 }
  0x27   : > { %4264 = vmatmul.mubr.msk.f32.vlgmr.msra.gmra.mxu0 %vm323_vm0, %v4599_v2 }
  0x28   : > { %4272 = vmatpush3.msra.mxu0 %v3987_v8  ;;  %4273 = vmatprep.mubr.msk.f32.mxu0 %vm323_vm0, %v4583_v0  ;;  %v4824_v8 = vsel %vm3463_vm6, 1.0, %v4531_v61 }
  0x29   : > { %4281 = vmatprep.subr.mxu0 %v3992_v9 }
  0x2b   : > { %4274 = vmatmul.mubr.msk.f32.vlgmr.msra.gmra.mxu0 %vm323_vm0, %v4599_v2 }
  0x2c   : > { %4282 = vmatpush3.msra.mxu0 %v3992_v9  ;;  %4283 = vmatprep.mubr.msk.f32.mxu0 %vm323_vm0, %v4583_v0  ;;  %v4826_v9 = vld [vmem:[%s296_s10] sm:$0xff] }
  0x2d   : > { %4291 = vmatprep.subr.mxu0 %v3997_v10  ;;  %vm3374_vm8 = vcmp.eq.s32.totalorder %v4826_v9, 0  ;;  %vm3396_vm9 = vcmp.eq.s32.totalorder %v4826_v9, 1  ;;  %vm3418_vm11 = vcmp.eq.s32.totalorder %v4826_v9, 2  ;;  %vm3440_vm13 = vcmp.eq.s32.totalorder %v4826_v9, 3 }
  0x2e   : > { %vm3462_vm15 = vcmp.eq.s32.totalorder %v4826_v9, 4  ;;  %vm3484_vm1 = vcmp.eq.s32.totalorder %v4826_v9, 5  ;;  %vm3528_vm6 = vcmp.eq.s32.totalorder %v4826_v9, 7 }
  0x2f   : > { %4284 = vmatmul.mubr.msk.f32.vlgmr.msra.gmra.mxu0 %vm323_vm0, %v4599_v2 }
  0x30   : > { %4292 = vmatpush3.msra.mxu0 %v3997_v10  ;;  %4293 = vmatprep.mubr.msk.f32.mxu0 %vm323_vm0, %v4583_v0 }
  0x31   : > { %4301 = vmatprep.subr.mxu0 %v4002_v11 }
  0x33   : > { %4294 = vmatmul.mubr.msk.f32.vlgmr.msra.gmra.mxu0 %vm323_vm0, %v4599_v2 }
  0x34   : > { %4302 = vmatpush3.msra.mxu0 %v4002_v11  ;;  %4303 = vmatprep.mubr.msk.f32.mxu0 %vm323_vm0, %v4583_v0  ;;  %v3473_v11 = vmul.f32 1.0166, %v4824_v8 }
  0x35   : > { %4311 = vmatprep.subr.mxu0 %v4007_v12 }
  0x37   : > { %4304 = vmatmul.mubr.msk.f32.vlgmr.msra.gmra.mxu0 %vm323_vm0, %v4599_v2 }
  0x38   : > { %4312 = vmatpush3.msra.mxu0 %v4007_v12  ;;  %4313 = vmatprep.mubr.msk.f32.mxu0 %vm323_vm0, %v4583_v0  ;;  %v4833_v12 = vsel %vm3485_vm7, 1.0, %v4531_v61  ;;  %vm3639_vm7 = vcmp.eq.s32.totalorder %v4778_v60, 12 }
  0x39   : > { %4321 = vmatprep.subr.mxu0 %v4012_v13 }
  0x3b   : > { %4314 = vmatmul.mubr.msk.f32.vlgmr.msra.gmra.mxu0 %vm323_vm0, %v4599_v2 }
  0x3c   : > { %4322 = vmatpush3.msra.mxu0 %v4012_v13  ;;  %4323 = vmatprep.mubr.msk.f32.mxu0 %vm323_vm0, %v4583_v0 }
  0x3d   : > { %4331 = vmatprep.subr.mxu0 %v4017_v14 }
  0x3f   : > { %4324 = vmatmul.mubr.msk.f32.vlgmr.msra.gmra.mxu0 %vm323_vm0, %v4599_v2 }
  0x40   : > { %4332 = vmatpush3.msra.mxu0 %v4017_v14  ;;  %4333 = vmatprep.mubr.msk.f32.mxu0 %vm323_vm0, %v4583_v0  ;;  %v3495_v14 = vmul.f32 0.9969, %v4833_v12 }
  0x41   : > { %4341 = vmatprep.subr.mxu0 %v4022_v15 }
  0x43   : > { %4334 = vmatmul.mubr.msk.f32.vlgmr.msra.gmra.mxu0 %vm323_vm0, %v4599_v2 }
  0x44   : > { %4342 = vmatpush3.msra.mxu0 %v4022_v15  ;;  %4343 = vmatprep.mubr.msk.f32.mxu0 %vm323_vm0, %v4583_v0  ;;  %v4838_v15 = vsel %vm3374_vm8, 1.0, %v4531_v61  ;;  %vm3550_vm8 = vcmp.eq.s32.totalorder %v4826_v9, 8 }
  0x45   : > { %4351 = vmatprep.subr.mxu0 %v4027_v16 }
  0x47   : > { %4344 = vmatmul.mubr.msk.f32.vlgmr.msra.gmra.mxu0 %vm323_vm0, %v4599_v2 }
  0x48   : > { %4352 = vmatpush3.msra.mxu0 %v4027_v16  ;;  %4353 = vmatprep.mubr.msk.f32.mxu0 %vm323_vm0, %v4583_v0  ;;  %v4841_v16 = vsel %vm3396_vm9, 1.0, %v4531_v61  ;;  %vm3661_vm9 = vcmp.eq.s32.totalorder %v4778_v60, 13 }
  0x49   : > { %4361 = vmatprep.subr.mxu0 %v4032_v17 }
  0x4b   : > { %4354 = vmatmul.mubr.msk.f32.vlgmr.msra.gmra.mxu0 %vm323_vm0, %v4599_v2 }
  0x4c   : > { %4362 = vmatpush3.msra.mxu0 %v4032_v17  ;;  %4363 = vmatprep.mubr.msk.f32.mxu0 %vm323_vm0, %v4583_v0  ;;  %v3384_v17 = vmul.f32 0.8373, %v4838_v15 }
  0x4d   : > { %4371 = vmatprep.subr.mxu0 %v4037_v18 }
  0x4f   : > { %4364 = vmatmul.mubr.msk.f32.vlgmr.msra.gmra.mxu0 %vm323_vm0, %v4599_v2 }
  0x50   : > { %4372 = vmatpush3.msra.mxu0 %v4037_v18  ;;  %4373 = vmatprep.mubr.msk.f32.mxu0 %vm323_vm0, %v4583_v0  ;;  %v3406_v18 = vmul.f32 0.918, %v4841_v16 }
  0x51   : > { %4381 = vmatprep.subr.mxu0 %v4042_v19 }
  0x53   : > { %4374 = vmatmul.mubr.msk.f32.vlgmr.msra.gmra.mxu0 %vm323_vm0, %v4599_v2 }
  0x54   : > { %4382 = vmatpush3.msra.mxu0 %v4042_v19  ;;  %4383 = vmatprep.mubr.msk.f32.mxu0 %vm323_vm0, %v4583_v0  ;;  %v4847_v19 = vsel %vm3507_vm10, 1.0, %v4531_v61  ;;  %vm3572_vm10 = vcmp.eq.s32.totalorder %v4826_v9, 9 }
  0x55   : > { %4391 = vmatprep.subr.mxu0 %v4047_v20 }
  0x57   : > { %4384 = vmatmul.mubr.msk.f32.vlgmr.msra.gmra.mxu0 %vm323_vm0, %v4599_v2 }
  0x58   : > { %4392 = vmatpush3.msra.mxu0 %v4047_v20  ;;  %4393 = vmatprep.mubr.msk.f32.mxu0 %vm323_vm0, %v4583_v0  ;;  %v3385_v0 = vmul.f32 0.8373, %v4805_v62 }
  0x5a   : > { %v3409_v3 = vadd.f32 %v3407_v1, %v3385_v0  ;;  %v4917_v1 = vsel %vm3661_vm9, 1.0, %v4531_v61  ;;  %vm3748_vm9 = vcmp.eq.s32.totalorder %v4826_v9, 17 }
  0x5b   : > { %4394 = vmatmul.mubr.msk.f32.vlgmr.msra.gmra.mxu0 %vm323_vm0, %v4599_v2  ;;  %v4814_v2 = vsel %vm3419_vm4, 1.0, %v4531_v61  ;;  %vm3506_vm4 = vcmp.eq.s32.totalorder %v4826_v9, 6 }
  0x5c   : > { %v3429_v4 = vmul.f32 0.866, %v4814_v2 }
  0x5e   : > { %v3431_v6 = vadd.f32 %v3429_v4, %v3409_v3  ;;  %v3671_v4 = vmul.f32 0.9037, %v4917_v1 }
  0x60   : > { %v3453_v10 = vadd.f32 %v3451_v7, %v3431_v6  ;;  %v4922_v6 = vsel %vm3572_vm10, 1.0, %v4531_v61  ;;  %vm3770_vm10 = vcmp.eq.s32.totalorder %v4826_v9, 18 }
  0x62   : > { %v3475_v13 = vadd.f32 %v3473_v11, %v3453_v10  ;;  %v3582_v10 = vmul.f32 1.0023, %v4922_v6 }
  0x64   : > { %v3497_v20 = vadd.f32 %v3495_v14, %v3475_v13 }
  0xd3   : > { %v4215_v22 = vpop.f32.mrf.mxu0 }
  0xd5   : > { %v396_v23 = vpop.f32.mrf.mxu0 }
  0xd6   : > { %4218 = vmatprep.mubr.msk.f32.mxu1 %vm323_vm0, %v396_v23  ;;  %v3408_v23 = vadd.f32 %v3406_v18, %v3384_v17 }
  0xd7   : > { %4219 = vmatmul.mubr.msk.f32.vlgmr.msra.gmra.mxu1 %vm323_vm0, %v4215_v22  ;;  %v4225_v24 = vpop.f32.mrf.mxu0  ;;  %v4852_v22 = vsel %vm3418_vm11, 1.0, %v4531_v61  ;;  %vm3683_vm11 = vcmp.eq.s32.totalorder %v4778_v60, 14 }
  0xd8   : > { %4227 = vmatpush3.msra.mxu1 %v4690_v21  ;;  %v4927_v11 = vsel %vm3683_vm11, 1.0, %v4531_v61  ;;  %vm3784_vm11 = vcmp.ne.s32.totalorder %v4826_v9, 255 }
  0xd9   : > { %v554_v25 = vpop.f32.mrf.mxu0  ;;  %4236 = vmatprep.subr.mxu1 %v4690_v21  ;;  %v3693_v17 = vmul.f32 1.0865, %v4927_v11 }
  0xda   : > { %4228 = vmatprep.mubr.msk.f32.mxu1 %vm323_vm0, %v554_v25  ;;  %v4857_v25 = vsel %vm3529_vm12, 1.0, %v4531_v61  ;;  %vm3594_vm12 = vcmp.eq.s32.totalorder %v4826_v9, 10 }
  0xdb   : > { %4229 = vmatmul.mubr.msk.f32.vlgmr.msra.gmra.mxu1 %vm323_vm0, %v4225_v24  ;;  %v4235_v26 = vpop.f32.mrf.mxu0  ;;  %v3428_v24 = vmul.f32 0.866, %v4852_v22 }
  0xdc   : > { %4237 = vmatpush3.msra.mxu1 %v4690_v21 }
  0xdd   : > { %v712_v27 = vpop.f32.mrf.mxu0  ;;  %4246 = vmatprep.subr.mxu1 %v4690_v21 }
  0xde   : > { %4238 = vmatprep.mubr.msk.f32.mxu1 %vm323_vm0, %v712_v27  ;;  %v3539_v27 = vmul.f32 1.0489, %v4857_v25 }
  0xdf   : > { %4239 = vmatmul.mubr.msk.f32.vlgmr.msra.gmra.mxu1 %vm323_vm0, %v4235_v26  ;;  %v4245_v28 = vpop.f32.mrf.mxu0 }
  0xe0   : > { %4247 = vmatpush3.msra.mxu1 %v4690_v21 }
  0xe1   : > { %v870_v29 = vpop.f32.mrf.mxu0  ;;  %4256 = vmatprep.subr.mxu1 %v4690_v21 }
  0xe2   : > { %4248 = vmatprep.mubr.msk.f32.mxu1 %vm323_vm0, %v870_v29  ;;  %v3430_v29 = vadd.f32 %v3428_v24, %v3408_v23 }
  0xe3   : > { %4249 = vmatmul.mubr.msk.f32.vlgmr.msra.gmra.mxu1 %vm323_vm0, %v4245_v28  ;;  %v4255_v30 = vpop.f32.mrf.mxu0  ;;  %v4862_v28 = vsel %vm3440_vm13, 1.0, %v4531_v61  ;;  %vm3705_vm13 = vcmp.eq.s32.totalorder %v4778_v60, 15 }
  0xe4   : > { %4257 = vmatpush3.msra.mxu1 %v4690_v21  ;;  %v4941_v24 = vsel %vm3705_vm13, 1.0, %v4531_v61 }
  0xe5   : > { %v1028_v31 = vpop.f32.mrf.mxu0  ;;  %4266 = vmatprep.subr.mxu1 %v4690_v21 }
  0xe6   : > { %4258 = vmatprep.mubr.msk.f32.mxu1 %vm323_vm0, %v1028_v31  ;;  %v4867_v31 = vsel %vm3551_vm14, 1.0, %v4531_v61  ;;  %vm3616_vm14 = vcmp.eq.s32.totalorder %v4826_v9, 11 }
  0xe7   : > { %4259 = vmatmul.mubr.msk.f32.vlgmr.msra.gmra.mxu1 %vm323_vm0, %v4255_v30  ;;  %v4265_v32 = vpop.f32.mrf.mxu0  ;;  %v3450_v30 = vmul.f32 1.0345, %v4862_v28 }
  0xe8   : > { %4267 = vmatpush3.msra.mxu1 %v4690_v21 }
  0xe9   : > { %v1186_v33 = vpop.f32.mrf.mxu0  ;;  %4276 = vmatprep.subr.mxu1 %v4690_v21 }
  0xea   : > { %4268 = vmatprep.mubr.msk.f32.mxu1 %vm323_vm0, %v1186_v33  ;;  %v3561_v33 = vmul.f32 0.8786, %v4867_v31 }
  0xeb   : > { %4269 = vmatmul.mubr.msk.f32.vlgmr.msra.gmra.mxu1 %vm323_vm0, %v4265_v32  ;;  %v4275_v34 = vpop.f32.mrf.mxu0 }
  0xec   : > { %4277 = vmatpush3.msra.mxu1 %v4690_v21 }
  0xed   : > { %v1344_v35 = vpop.f32.mrf.mxu0  ;;  %4286 = vmatprep.subr.mxu1 %v4690_v21 }
  0xee   : > { %4278 = vmatprep.mubr.msk.f32.mxu1 %vm323_vm0, %v1344_v35  ;;  %v3452_v35 = vadd.f32 %v3450_v30, %v3430_v29  ;;  %v3715_v29 = vmul.f32 1.0955, %v4941_v24 }
  0xef   : > { %4279 = vmatmul.mubr.msk.f32.vlgmr.msra.gmra.mxu1 %vm323_vm0, %v4275_v34  ;;  %v4285_v36 = vpop.f32.mrf.mxu0  ;;  %v4872_v34 = vsel %vm3462_vm15, 1.0, %v4531_v61  ;;  %vm3727_vm15 = vcmp.eq.s32.totalorder %v4778_v60, 16 }
  0xf0   : > { %4287 = vmatpush3.msra.mxu1 %v4690_v21 }
  0xf1   : > { %v1502_v37 = vpop.f32.mrf.mxu0  ;;  %4296 = vmatprep.subr.mxu1 %v4690_v21 }
  0xf2   : > { %4288 = vmatprep.mubr.msk.f32.mxu1 %vm323_vm0, %v1502_v37 }
  0xf3   : > { %4289 = vmatmul.mubr.msk.f32.vlgmr.msra.gmra.mxu1 %vm323_vm0, %v4285_v36  ;;  %v4295_v38 = vpop.f32.mrf.mxu0  ;;  %v3472_v36 = vmul.f32 1.0166, %v4872_v34 }
  0xf4   : > { %4297 = vmatpush3.msra.mxu1 %v4690_v21 }
  0xf5   : > { %v1660_v39 = vpop.f32.mrf.mxu0  ;;  %4306 = vmatprep.subr.mxu1 %v4690_v21 }
  0xf6   : > { %4298 = vmatprep.mubr.msk.f32.mxu1 %vm323_vm0, %v1660_v39 }
  0xf7   : > { %4299 = vmatmul.mubr.msk.f32.vlgmr.msra.gmra.mxu1 %vm323_vm0, %v4295_v38  ;;  %v4305_v40 = vpop.f32.mrf.mxu0 }
  0xf8   : > { %4307 = vmatpush3.msra.mxu1 %v4690_v21 }
  0xf9   : > { %v1818_v41 = vpop.f32.mrf.mxu0  ;;  %4316 = vmatprep.subr.mxu1 %v4690_v21 }
  0xfa   : > { %4308 = vmatprep.mubr.msk.f32.mxu1 %vm323_vm0, %v1818_v41  ;;  %v3474_v41 = vadd.f32 %v3472_v36, %v3452_v35  ;;  %v4955_v36 = vsel %vm3727_vm15, 1.0, %v4531_v61 }
  0xfb   : > { %4309 = vmatmul.mubr.msk.f32.vlgmr.msra.gmra.mxu1 %vm323_vm0, %v4305_v40  ;;  %v4315_v42 = vpop.f32.mrf.mxu0  ;;  %v4882_v40 = vsel %vm3484_vm1, 1.0, %v4531_v61  ;;  %vm3749_vm1 = vcmp.eq.s32.totalorder %v4778_v60, 17 }
  0xfc   : > { %4317 = vmatpush3.msra.mxu1 %v4690_v21 }
  0xfd   : > { %v1976_v43 = vpop.f32.mrf.mxu0  ;;  %4326 = vmatprep.subr.mxu1 %v4690_v21 }
  0xfe   : > { %4318 = vmatprep.mubr.msk.f32.mxu1 %vm323_vm0, %v1976_v43  ;;  %v4887_v43 = vsel %vm3595_vm2, 1.0, %v4531_v61  ;;  %vm3660_vm2 = vcmp.eq.s32.totalorder %v4826_v9, 13 }
  0xff   : > { %4319 = vmatmul.mubr.msk.f32.vlgmr.msra.gmra.mxu1 %vm323_vm0, %v4315_v42  ;;  %v4325_v44 = vpop.f32.mrf.mxu0  ;;  %v3494_v42 = vmul.f32 0.9969, %v4882_v40 }
 0x100   : > { %4327 = vmatpush3.msra.mxu1 %v4690_v21 }
 0x101   : > { %v2134_v45 = vpop.f32.mrf.mxu0  ;;  %4336 = vmatprep.subr.mxu1 %v4690_v21 }
 0x102   : > { %4328 = vmatprep.mubr.msk.f32.mxu1 %vm323_vm0, %v2134_v45  ;;  %v3605_v45 = vmul.f32 0.9539, %v4887_v43 }
 0x103   : > { %4329 = vmatmul.mubr.msk.f32.vlgmr.msra.gmra.mxu1 %vm323_vm0, %v4325_v44  ;;  %v4335_v46 = vpop.f32.mrf.mxu0 }
 0x104   : > { %4337 = vmatpush3.msra.mxu1 %v4690_v21 }
 0x105   : > { %v2292_v47 = vpop.f32.mrf.mxu0  ;;  %4346 = vmatprep.subr.mxu1 %v4690_v21 }
 0x106   : > { %4338 = vmatprep.mubr.msk.f32.mxu1 %vm323_vm0, %v2292_v47  ;;  %v3496_v47 = vadd.f32 %v3494_v42, %v3474_v41  ;;  %v3737_v41 = vmul.f32 1.0865, %v4955_v36 }
 0x107   : > { %4339 = vmatmul.mubr.msk.f32.vlgmr.msra.gmra.mxu1 %vm323_vm0, %v4335_v46  ;;  %v4345_v48 = vpop.f32.mrf.mxu0  ;;  %v4892_v46 = vsel %vm3506_vm4, 1.0, %v4531_v61  ;;  %vm3771_vm4 = vcmp.eq.s32.totalorder %v4778_v60, 18 }
 0x108   : > { %4347 = vmatpush3.msra.mxu1 %v4690_v21 }
 0x109   : > { %v2450_v49 = vpop.f32.mrf.mxu0  ;;  %4356 = vmatprep.subr.mxu1 %v4690_v21 }
 0x10a   : > { %4348 = vmatprep.mubr.msk.f32.mxu1 %vm323_vm0, %v2450_v49  ;;  %v4897_v49 = vsel %vm3617_vm5, 1.0, %v4531_v61  ;;  %vm3682_vm5 = vcmp.eq.s32.totalorder %v4826_v9, 14 }
 0x10b   : > { %4349 = vmatmul.mubr.msk.f32.vlgmr.msra.gmra.mxu1 %vm323_vm0, %v4345_v48  ;;  %v4355_v50 = vpop.f32.mrf.mxu0  ;;  %v3516_v48 = vmul.f32 0.9754, %v4892_v46 }
 0x10c   : > { %4357 = vmatpush3.msra.mxu1 %v4690_v21 }
 0x10d   : > { %v2608_v51 = vpop.f32.mrf.mxu0  ;;  %4366 = vmatprep.subr.mxu1 %v4690_v21 }
 0x10e   : > { %4358 = vmatprep.mubr.msk.f32.mxu1 %vm323_vm0, %v2608_v51  ;;  %v3627_v51 = vmul.f32 0.9843, %v4897_v49 }
 0x10f   : > { %4359 = vmatmul.mubr.msk.f32.vlgmr.msra.gmra.mxu1 %vm323_vm0, %v4355_v50  ;;  %v4365_v52 = vpop.f32.mrf.mxu0 }
 0x110   : > { %4367 = vmatpush3.msra.mxu1 %v4690_v21 }
 0x111   : > { %v2766_v53 = vpop.f32.mrf.mxu0  ;;  %4376 = vmatprep.subr.mxu1 %v4690_v21 }
 0x112   : > { %4368 = vmatprep.mubr.msk.f32.mxu1 %vm323_vm0, %v2766_v53  ;;  %v3518_v53 = vadd.f32 %v3516_v48, %v3496_v47 }
 0x113   : > { %4369 = vmatmul.mubr.msk.f32.vlgmr.msra.gmra.mxu1 %vm323_vm0, %v4365_v52  ;;  %v4375_v54 = vpop.f32.mrf.mxu0  ;;  %v4902_v52 = vsel %vm3528_vm6, 1.0, %v4531_v61  ;;  %vm3704_vm6 = vcmp.eq.s32.totalorder %v4826_v9, 15 }
 0x114   : > { %4377 = vmatpush3.msra.mxu1 %v4690_v21 }
 0x115   : > { %v2924_v55 = vpop.f32.mrf.mxu0  ;;  %4386 = vmatprep.subr.mxu1 %v4690_v21 }
 0x116   : > { %4378 = vmatprep.mubr.msk.f32.mxu1 %vm323_vm0, %v2924_v55  ;;  %v4907_v55 = vsel %vm3639_vm7, 1.0, %v4531_v61  ;;  %vm3785_vm7 = vcmp.ne.s32.totalorder %v4778_v60, 255 }
 0x117   : > { %4379 = vmatmul.mubr.msk.f32.vlgmr.msra.gmra.mxu1 %vm323_vm0, %v4375_v54  ;;  %v4385_v56 = vpop.f32.mrf.mxu0  ;;  %v3538_v54 = vmul.f32 1.0489, %v4902_v52 }
 0x118   : > { %4387 = vmatpush3.msra.mxu1 %v4690_v21 }
 0x119   : > { %v3082_v57 = vpop.f32.mrf.mxu0  ;;  %4396 = vmatprep.subr.mxu1 %v4690_v21 }
 0x11a   : > { %4388 = vmatprep.mubr.msk.f32.mxu1 %vm323_vm0, %v3082_v57  ;;  %v3649_v57 = vmul.f32 1.1116, %v4907_v55 }
 0x11b   : > { %4389 = vmatmul.mubr.msk.f32.vlgmr.msra.gmra.mxu1 %vm323_vm0, %v4385_v56  ;;  %v4395_v58 = vpop.f32.mrf.mxu0 }
 0x11c   : > { %4397 = vmatpush3.msra.mxu1 %v4690_v21  ;;  %v3517_v21 = vmul.f32 0.9754, %v4847_v19 }
 0x11d   : > { %v3240_v59 = vpop.f32.mrf.mxu0 }
 0x11e   : > { %4398 = vmatprep.mubr.msk.f32.mxu1 %vm323_vm0, %v3240_v59  ;;  %v3519_v26 = vadd.f32 %v3517_v21, %v3497_v20  ;;  %v3540_v59 = vadd.f32 %v3538_v54, %v3518_v53  ;;  %v4936_v20 = vsel %vm3594_vm12, 1.0, %v4531_v61 }
 0x11f   : > { %4399 = vmatmul.mubr.msk.f32.vlgmr.msra.gmra.mxu1 %vm323_vm0, %v4395_v58  ;;  %vm3573_vm0 = vcmp.eq.s32.totalorder %v4778_v60, 9  ;;  %v4912_v58 = vsel %vm3550_vm8, 1.0, %v4531_v61  ;;  %v3604_v23 = vmul.f32 0.9539, %v4936_v20  ;;  %v4091_v60 = vsel %vm3785_vm7, 1.0, %v4531_v61 }
 0x120   : > { %v3541_v32 = vadd.f32 %v3539_v27, %v3519_v26  ;;  %v4877_v37 = vsel %vm3573_vm0, 1.0, %v4531_v61  ;;  %v3560_v0 = vmul.f32 0.8786, %v4912_v58  ;;  %vm3638_vm0 = vcmp.eq.s32.totalorder %v4826_v9, 12 }
 0x121   : > { %v3583_v39 = vmul.f32 1.0023, %v4877_v37  ;;  %vm3726_vm8 = vcmp.eq.s32.totalorder %v4826_v9, 16 }
 0x122   : > { %v3563_v38 = vadd.f32 %v3561_v33, %v3541_v32  ;;  %v3562_v7 = vadd.f32 %v3560_v0, %v3540_v59  ;;  %v4950_v32 = vsel %vm3616_vm14, 1.0, %v4531_v61  ;;  %v4986_v0 = vsel %vm3660_vm2, 1.0, %v4531_v61 }
 0x123   : > { %v3626_v35 = vmul.f32 0.9843, %v4950_v32 }
 0x124   : > { %v3585_v44 = vadd.f32 %v3583_v39, %v3563_v38  ;;  %v3584_v21 = vadd.f32 %v3582_v10, %v3562_v7  ;;  %v3670_v7 = vmul.f32 0.9037, %v4986_v0 }
 0x126   : > { %v3607_v50 = vadd.f32 %v3605_v45, %v3585_v44  ;;  %v3606_v33 = vadd.f32 %v3604_v23, %v3584_v21  ;;  %v4966_v45 = vsel %vm3638_vm0, 1.0, %v4531_v61 }
 0x127   : > { %v3648_v54 = vmul.f32 1.1116, %v4966_v45 }
 0x128   : > { %v3629_v56 = vadd.f32 %v3627_v51, %v3607_v50  ;;  %v3628_v50 = vadd.f32 %v3626_v35, %v3606_v33  ;;  %v4973_v51 = vsel %vm3749_vm1, 1.0, %v4531_v61 }
 0x12a   : > { %v3651_v3 = vadd.f32 %v3649_v57, %v3629_v56  ;;  %v3759_v56 = vmul.f32 1.1529, %v4973_v51 }
 0x12c   : > { %v3673_v14 = vadd.f32 %v3671_v4, %v3651_v3  ;;  %v3650_v4 = vadd.f32 %v3648_v54, %v3628_v50 }
 0x12e   : > { %v3695_v27 = vadd.f32 %v3693_v17, %v3673_v14  ;;  %v4993_v14 = vsel %vm3771_vm4, 1.0, %v4531_v61 }
 0x12f   : > { %v3781_v23 = vmul.f32 1.0507, %v4993_v14 }
 0x130   : > { %v3717_v39 = vadd.f32 %v3715_v29, %v3695_v27  ;;  %v5003_v29 = vsel %vm3682_vm5, 1.0, %v4531_v61 }
 0x197   : > { %v4929_v13 = vpop.f32.mrf.mxu1 }
 0x198   : > { %v3381_v47 = vmul.f32 %v4929_v13, %v4805_v62 }
 0x199   : > { %v4933_v18 = vpop.f32.mrf.mxu1 }
 0x19a   : > { %v3380_v33 = vmul.f32 %v4838_v15, %v4933_v18 }
 0x19b   : > { %v4943_v26 = vpop.f32.mrf.mxu1 }
 0x19c   : > { %v3403_v42 = vmul.f32 %v4943_v26, %v4808_v63  ;;  %v3739_v63 = vadd.f32 %v3737_v41, %v3717_v39  ;;  %v3692_v41 = vmul.f32 1.0865, %v5003_v29 }
 0x19d   : > { %v4947_v30 = vpop.f32.mrf.mxu1 }
 0x19e   : > { %v3405_v57 = vadd.f32 %v3403_v42, %v3381_v47  ;;  %v3761_v10 = vadd.f32 %v3759_v56, %v3739_v63 }
 0x19f   : > { %v4957_v38 = vpop.f32.mrf.mxu1 }
 0x1a0   : > { %v3425_v48 = vmul.f32 %v4957_v38, %v4814_v2  ;;  %v3783_v50 = vadd.f32 %v3781_v23, %v3761_v10 }
 0x1a1   : > { %v4963_v44 = vpop.f32.mrf.mxu1 }
 0x1a2   : > { %v3427_v59 = vadd.f32 %v3425_v48, %v3405_v57  ;;  %v3424_v35 = vmul.f32 %v4852_v22, %v4963_v44  ;;  %v5021_v22 = vsel %vm3704_vm6, 1.0, %v4531_v61 }
 0x1a3   : > { %v4975_v53 = vpop.f32.mrf.mxu1 }
 0x1a4   : > { %v3447_v62 = vmul.f32 %v4975_v53, %v4819_v5  ;;  %v3402_v5 = vmul.f32 %v4841_v16, %v4947_v30 }
 0x1a5   : > { %v4983_v2 = vpop.f32.mrf.mxu1 }
 0x1a6   : > { %v3449_v17 = vadd.f32 %v3447_v62, %v3427_v59  ;;  %v3404_v42 = vadd.f32 %v3402_v5, %v3380_v33  ;;  %v3446_v47 = vmul.f32 %v4862_v28, %v4983_v2  ;;  %v3810_v5 = vld [vmem:[%s4790_s16 + $0x8] sm:$0xff] }
 0x1a7   : > { %v4989_v3 = vpop.f32.mrf.mxu1 }
 0x1a8   : > { %v3469_v21 = vmul.f32 %v4989_v3, %v4824_v8  ;;  %v3672_v8 = vadd.f32 %v3670_v7, %v3650_v4  ;;  %v3426_v54 = vadd.f32 %v3424_v35, %v3404_v42  ;;  %v5034_v7 = vmul.f32 %v4091_v60, %v3783_v50 }
 0x1a9   : > { %v5000_v27 = vpop.f32.mrf.mxu1 }
 0x1aa   : > { %v3471_v16 = vadd.f32 %v3469_v21, %v3449_v17  ;;  %v3468_v63 = vmul.f32 %v4872_v34, %v5000_v27  ;;  %v3694_v57 = vadd.f32 %v3692_v41, %v3672_v8  ;;  %v3448_v62 = vadd.f32 %v3446_v47, %v3426_v54 }
 0x1ab   : > { %v5011_v39 = vpop.f32.mrf.mxu1  ;;  %v5039_v34 = vsel %vm3726_vm8, 1.0, %v4531_v61  ;;  %v3812_v33 = vadd.f32 %v3810_v5, %v5034_v7 }
 0x1ac   : > { %v3491_v48 = vmul.f32 %v5011_v39, %v4833_v12  ;;  %v3714_v12 = vmul.f32 1.0955, %v5021_v22  ;;  %v3470_v17 = vadd.f32 %v3468_v63, %v3448_v62 }
 0x1ad   : > { %v5018_v15 = vpop.f32.mrf.mxu1  ;;  %3814 = vst.msk [vmem:[%s4790_s16 + $0x8] sm:$0xff] %vm312_vm3, %v3812_v33 }
 0x1ae   : > { %v3493_v56 = vadd.f32 %v3491_v48, %v3471_v16  ;;  %v3490_v59 = vmul.f32 %v4882_v40, %v5018_v15  ;;  %v3716_v35 = vadd.f32 %v3714_v12, %v3694_v57  ;;  %v5058_v48 = vsel %vm3748_vm9, 1.0, %v4531_v61 }
 0x1af   : > { %v5027_v28 = vpop.f32.mrf.mxu1  ;;  %v3758_v54 = vmul.f32 1.1529, %v5058_v48  ;;  %v5071_v12 = vsel %vm3770_vm10, 1.0, %v4531_v61 }
 0x1b0   : > { %v3513_v4 = vmul.f32 %v5027_v28, %v4847_v19  ;;  %v3736_v19 = vmul.f32 1.0865, %v5039_v34  ;;  %v3492_v16 = vadd.f32 %v3490_v59, %v3470_v17 }
 0x1b1   : > { %v5036_v10 = vpop.f32.mrf.mxu1 }
 0x1b2   : > { %v3515_v21 = vadd.f32 %v3513_v4, %v3493_v56  ;;  %v3512_v23 = vmul.f32 %v4892_v46, %v5036_v10  ;;  %v3738_v60 = vadd.f32 %v3736_v19, %v3716_v35  ;;  %v3780_v4 = vmul.f32 1.0507, %v5071_v12 }
 0x1b3   : > { %v5045_v40 = vpop.f32.mrf.mxu1 }
 0x1b4   : > { %v3535_v8 = vmul.f32 %v5045_v40, %v4857_v25  ;;  %v3514_v42 = vadd.f32 %v3512_v23, %v3492_v16  ;;  %v3760_v59 = vadd.f32 %v3758_v54, %v3738_v60 }
 0x1b5   : > { %v5053_v41 = vpop.f32.mrf.mxu1 }
 0x1b6   : > { %v3537_v47 = vadd.f32 %v3535_v8, %v3515_v21  ;;  %v3534_v46 = vmul.f32 %v4902_v52, %v5053_v41  ;;  %v3782_v35 = vadd.f32 %v3780_v4, %v3760_v59  ;;  %v4090_v8 = vsel %vm3784_vm11, 1.0, %v4531_v61  ;;  %v3809_v61 = vld [vmem:[%s4790_s16] sm:$0xff] }
 0x1b7   : > { %v5060_v50 = vpop.f32.mrf.mxu1 }
 0x1b8   : > { %v3536_v25 = vadd.f32 %v3534_v46, %v3514_v42  ;;  %v3557_v63 = vmul.f32 %v5060_v50, %v4867_v31  ;;  %v3331_v31 = vmax.f32 %v4929_v13, %v4943_v26  ;;  %v5098_v60 = vmul.f32 %v4090_v8, %v3782_v35 }
 0x1b9   : > { %v5066_v56 = vpop.f32.mrf.mxu1 }
 0x1ba   : > { %v3559_v57 = vadd.f32 %v3557_v63, %v3537_v47  ;;  %v3556_v52 = vmul.f32 %v4912_v58, %v5066_v56  ;;  %v3333_v19 = vmax.f32 %v3331_v31, %v4957_v38 }
 0x1bb   : > { %v5073_v62 = vpop.f32.mrf.mxu1 }
 0x1bc   : > { %v3558_v5 = vadd.f32 %v3556_v52, %v3536_v25  ;;  %v3579_v17 = vmul.f32 %v5073_v62, %v4877_v37  ;;  %v3335_v42 = vmax.f32 %v3333_v19, %v4975_v53 }
 0x1bd   : > { %v5078_v21 = vpop.f32.mrf.mxu1 }
 0x1be   : > { %v3581_v58 = vadd.f32 %v3579_v17, %v3559_v57  ;;  %v3578_v23 = vmul.f32 %v4922_v6, %v5078_v21  ;;  %v3337_v54 = vmax.f32 %v3335_v42, %v4989_v3  ;;  %v3811_v57 = vadd.f32 %v3809_v61, %v5098_v60 }
 0x1bf   : > { %v5085_v33 = vpop.f32.mrf.mxu1 }
 0x1c0   : > { %v3580_v16 = vadd.f32 %v3578_v23, %v3558_v5  ;;  %v3601_v37 = vmul.f32 %v5085_v33, %v4887_v43  ;;  %v3339_v52 = vmax.f32 %v3337_v54, %v5011_v39  ;;  %3813 = vst.msk [vmem:[%s4790_s16] sm:$0xff] %vm312_vm3, %v3811_v57 }
 0x1c1   : > { %v5091_v9 = vpop.f32.mrf.mxu1 }
 0x1c2   : > { %v3603_v47 = vadd.f32 %v3601_v37, %v3581_v58  ;;  %v3600_v6 = vmul.f32 %v4936_v20, %v5091_v9  ;;  %v3341_v5 = vmax.f32 %v3339_v52, %v5027_v28 }
 0x1c3   : > { %v5096_v46 = vpop.f32.mrf.mxu1 }
 0x1c4   : > { %v3602_v25 = vadd.f32 %v3600_v6, %v3580_v16  ;;  %v3623_v43 = vmul.f32 %v5096_v46, %v4897_v49  ;;  %v3343_v58 = vmax.f32 %v3341_v5, %v5045_v40 }
 0x1c5   : > { %v5104_v63 = vpop.f32.mrf.mxu1 }
 0x1c6   : > { %v3625_v59 = vadd.f32 %v3623_v43, %v3603_v47  ;;  %v3622_v20 = vmul.f32 %v4950_v32, %v5104_v63  ;;  %v3330_v32 = vmax.f32 %v4933_v18, %v4947_v30  ;;  %v3345_v16 = vmax.f32 %v3343_v58, %v5060_v50 }
 0x1c7   : > { %v5110_v4 = vpop.f32.mrf.mxu1 }
 0x1c8   : > { %v3624_v17 = vadd.f32 %v3622_v20, %v3602_v25  ;;  %v3645_v49 = vmul.f32 %v5110_v4, %v4907_v55  ;;  %v3332_v55 = vmax.f32 %v3330_v32, %v4963_v44  ;;  %v3347_v47 = vmax.f32 %v3345_v16, %v5073_v62 }
 0x1c9   : > { %v5117_v31 = vpop.f32.mrf.mxu1 }
 0x1ca   : > { %v3647_v23 = vadd.f32 %v3645_v49, %v3625_v59  ;;  %v3644_v35 = vmul.f32 %v4966_v45, %v5117_v31  ;;  %v3334_v54 = vmax.f32 %v3332_v55, %v4983_v2  ;;  %v3349_v43 = vmax.f32 %v3347_v47, %v5085_v33 }
 0x1cb   : > { %v5124_v19 = vpop.f32.mrf.mxu1 }
 0x1cc   : > { %v3646_v37 = vadd.f32 %v3644_v35, %v3624_v17  ;;  %v3667_v8 = vmul.f32 %v5124_v19, %v4917_v1  ;;  %v3336_v57 = vmax.f32 %v3334_v54, %v5000_v27  ;;  %v3351_v59 = vmax.f32 %v3349_v43, %v5096_v46 }
 0x1cd   : > { %v5130_v42 = vpop.f32.mrf.mxu1 }
 0x1ce   : > { %v3669_v6 = vadd.f32 %v3667_v8, %v3647_v23  ;;  %v3666_v45 = vmul.f32 %v4986_v0, %v5130_v42  ;;  %v3338_v5 = vmax.f32 %v3336_v57, %v5018_v15  ;;  %v3353_v49 = vmax.f32 %v3351_v59, %v5110_v4 }
 0x1cf   : > { %v5136_v25 = vpop.f32.mrf.mxu1 }
 0x1d0   : > { %v3668_v61 = vadd.f32 %v3666_v45, %v3646_v37  ;;  %v3689_v1 = vmul.f32 %v5136_v25, %v4927_v11  ;;  %v3340_v23 = vmax.f32 %v3338_v5, %v5036_v10  ;;  %v3355_v32 = vmax.f32 %v3353_v49, %v5124_v19 }
 0x1d1   : > { %v5142_v52 = vpop.f32.mrf.mxu1 }
 0x1d2   : > { %v3691_v20 = vadd.f32 %v3689_v1, %v3669_v6  ;;  %v3688_v0 = vmul.f32 %v5003_v29, %v5142_v52  ;;  %v3342_v37 = vmax.f32 %v3340_v23, %v5053_v41  ;;  %v3357_v55 = vmax.f32 %v3355_v32, %v5136_v25 }
 0x1d3   : > { %v5148_v17 = vpop.f32.mrf.mxu1 }
 0x1d4   : > { %v3690_v58 = vadd.f32 %v3688_v0, %v3668_v61  ;;  %v3711_v11 = vmul.f32 %v5148_v17, %v4941_v24  ;;  %v3344_v6 = vmax.f32 %v3342_v37, %v5066_v56  ;;  %v3359_v54 = vmax.f32 %v3357_v55, %v5148_v17 }
 0x1d5   : > { %v5154_v35 = vpop.f32.mrf.mxu1 }
 0x1d6   : > { %v3713_v16 = vadd.f32 %v3711_v11, %v3691_v20  ;;  %v3710_v29 = vmul.f32 %v5021_v22, %v5154_v35  ;;  %v3346_v61 = vmax.f32 %v3344_v6, %v5078_v21 }
 0x1d7   : > { %v5160_v8 = vpop.f32.mrf.mxu1 }
 0x1d8   : > { %v3712_v47 = vadd.f32 %v3710_v29, %v3690_v58  ;;  %v3733_v24 = vmul.f32 %v5160_v8, %v4955_v36  ;;  %v3361_v57 = vmax.f32 %v3359_v54, %v5160_v8  ;;  %v3348_v20 = vmax.f32 %v3346_v61, %v5091_v9 }
 0x1d9   : > { %v5166_v45 = vpop.f32.mrf.mxu1 }
 0x1da   : > { %v3735_v43 = vadd.f32 %v3733_v24, %v3713_v16  ;;  %v3732_v22 = vmul.f32 %v5039_v34, %v5166_v45  ;;  %v3350_v58 = vmax.f32 %v3348_v20, %v5104_v63 }
 0x1db   : > { %v5172_v1 = vpop.f32.mrf.mxu1 }
 0x1dc   : > { %v3734_v59 = vadd.f32 %v3732_v22, %v3712_v47  ;;  %v3755_v36 = vmul.f32 %v5172_v1, %v4973_v51  ;;  %v3363_v5 = vmax.f32 %v3361_v57, %v5172_v1  ;;  %v3352_v51 = vmax.f32 %v3350_v58, %v5117_v31 }
 0x1dd   : > { %v5178_v0 = vpop.f32.mrf.mxu1 }
 0x1de   : > { %v3757_v49 = vadd.f32 %v3755_v36, %v3735_v43  ;;  %v3754_v34 = vmul.f32 %v5058_v48, %v5178_v0  ;;  %v3354_v37 = vmax.f32 %v3352_v51, %v5130_v42 }
 0x1df   : > { %v5184_v11 = vpop.f32.mrf.mxu1 }
 0x1e0   : > { %v5186_v23 = vadd.f32 %v3754_v34, %v3734_v59  ;;  %v5189_v32 = vmax.f32 %v3363_v5, %v5184_v11  ;;  %v3356_v6 = vmax.f32 %v3354_v37, %v5142_v52  ;;  %v3777_v22 = vmul.f32 %v5184_v11, %v4993_v14 }
 0x1e1   : > { %v5212_v59 = vpop.f32.mrf.mxu1 }
 0x1e2   : > { %v3367_v16 = vsub.f32 %v4929_v13, %v5189_v32  ;;  %v3389_v29 = vsub.f32 %v4943_v26, %v5189_v32  ;;  %v3411_v48 = vsub.f32 %v4957_v38, %v5189_v32  ;;  %v3433_v55 = vsub.f32 %v4975_v53, %v5189_v32 }
 0x1e3   : > { %v3455_v43 = vsub.f32 %v4989_v3, %v5189_v32  ;;  %v3358_v13 = vmax.f32 %v3356_v6, %v5154_v35  ;;  %v3477_v38 = vsub.f32 %v5011_v39, %v5189_v32  ;;  %v3499_v57 = vsub.f32 %v5027_v28, %v5189_v32 }
 0x1e4   : > { %v3370_v47 = vmul.f32 1.442695, %v3367_v16  ;;  %v3392_v24 = vmul.f32 1.442695, %v3389_v29  ;;  %v3414_v54 = vmul.f32 1.442695, %v3411_v48  ;;  %v3521_v20 = vsub.f32 %v5045_v40, %v5189_v32 }
 0x1e5   : > { %v3436_v26 = vmul.f32 1.442695, %v3433_v55  ;;  %v3360_v53 = vmax.f32 %v3358_v13, %v5166_v45  ;;  %v3458_v61 = vmul.f32 1.442695, %v3455_v43  ;;  %v3480_v36 = vmul.f32 1.442695, %v3477_v38 }
 0x1e6   : > { %4427 = vpow2.f32 %v3370_v47  ;;  %v3543_v39 = vsub.f32 %v5060_v50, %v5189_v32  ;;  %v5219_v14 = vadd.f32 %v3777_v22, %v3757_v49  ;;  %v3502_v5 = vmul.f32 1.442695, %v3499_v57 }
 0x1e7   : > { %4429 = vpow2.f32 %v3392_v24  ;;  %v3362_v3 = vmax.f32 %v3360_v53, %v5178_v0  ;;  %v3776_v28 = vmul.f32 %v5071_v12, %v5212_v59  ;;  %v3524_v58 = vmul.f32 1.442695, %v3521_v20 }
 0x1e8   : > { %4431 = vpow2.f32 %v3414_v54  ;;  %v3565_v51 = vsub.f32 %v5073_v62, %v5189_v32  ;;  %v3587_v40 = vsub.f32 %v5085_v33, %v5189_v32  ;;  %v3546_v50 = vmul.f32 1.442695, %v3543_v39 }
 0x1e9   : > { %4433 = vpow2.f32 %v3436_v26  ;;  %v5222_v34 = vmax.f32 %v3362_v3, %v5212_v59  ;;  %v3609_v12 = vsub.f32 %v5096_v46, %v5189_v32  ;;  %v3631_v47 = vsub.f32 %v5110_v4, %v5189_v32 }
 0x1ea   : > { %4435 = vpow2.f32 %v3458_v61  ;;  %v3568_v48 = vmul.f32 1.442695, %v3565_v51  ;;  %v3590_v55 = vmul.f32 1.442695, %v3587_v40  ;;  %v3653_v46 = vsub.f32 %v5124_v19, %v5189_v32 }
 0x1eb   : > { %4437 = vpow2.f32 %v3480_v36  ;;  %v3366_v49 = vsub.f32 %v4933_v18, %v5222_v34  ;;  %v3388_v16 = vsub.f32 %v4947_v30, %v5222_v34  ;;  %v3410_v62 = vsub.f32 %v4963_v44, %v5222_v34 }
 0x1ec   : > { %4439 = vpow2.f32 %v3502_v5  ;;  %v3432_v30 = vsub.f32 %v4983_v2, %v5222_v34  ;;  %v3612_v43 = vmul.f32 1.442695, %v3609_v12  ;;  %v3454_v26 = vsub.f32 %v5000_v27, %v5222_v34 }
 0x1ed   : > { %4441 = vpow2.f32 %v3524_v58  ;;  %v3368_v18 = vmul.f32 1.442695, %v3366_v49  ;;  %v3390_v6 = vmul.f32 1.442695, %v3388_v16  ;;  %v3412_v44 = vmul.f32 1.442695, %v3410_v62 }
 0x1ee   : > { %4443 = vpow2.f32 %v3546_v50  ;;  %v3634_v4 = vmul.f32 1.442695, %v3631_v47  ;;  %v3675_v22 = vsub.f32 %v5136_v25, %v5189_v32  ;;  %v3697_v2 = vsub.f32 %v5148_v17, %v5189_v32 }
 0x1ef   : > { %4445 = vpow2.f32 %v3568_v48  ;;  %v3434_v61 = vmul.f32 1.442695, %v3432_v30  ;;  %v3476_v19 = vsub.f32 %v5018_v15, %v5222_v34  ;;  %v3656_v3 = vmul.f32 1.442695, %v3653_v46 }
 0x1f0   : > { %4447 = vpow2.f32 %v3590_v55  ;;  %v5253_v27 = vadd.f32 %v3776_v28, %v5186_v23  ;;  %v3456_v20 = vmul.f32 1.442695, %v3454_v26  ;;  %v3498_v25 = vsub.f32 %v5036_v10, %v5222_v34 }
 0x1f1   : > { %4449 = vpow2.f32 %v3368_v18  ;;  %v3678_v17 = vmul.f32 1.442695, %v3675_v22  ;;  %v3719_v5 = vsub.f32 %v5160_v8, %v5189_v32  ;;  %v3478_v15 = vmul.f32 1.442695, %v3476_v19 }
 0x1f2   : > { %4451 = vpow2.f32 %v3390_v6  ;;  %v3520_v51 = vsub.f32 %v5053_v41, %v5222_v34  ;;  %v3700_v28 = vmul.f32 1.442695, %v3697_v2  ;;  %v3741_v40 = vsub.f32 %v5172_v1, %v5189_v32 }
 0x1f3   : > { %v4428_v29 = vpop.eup %4427  ;;  %4453 = vpow2.f32 %v3612_v43  ;;  %v3500_v10 = vmul.f32 1.442695, %v3498_v25  ;;  %v3542_v49 = vsub.f32 %v5066_v56, %v5222_v34  ;;  %v3722_v8 = vmul.f32 1.442695, %v3719_v5 }
 0x1f4   : > { %v4430_v37 = vpop.eup %4429  ;;  %4455 = vpow2.f32 %v3412_v44  ;;  %v3522_v41 = vmul.f32 1.442695, %v3520_v51  ;;  %v3564_v12 = vsub.f32 %v5078_v21, %v5222_v34  ;;  %v3744_v1 = vmul.f32 1.442695, %v3741_v40 }
 0x1f5   : > { %v3395_v33 = vadd.f32 %v4430_v37, %v4428_v29  ;;  %v4432_v24 = vpop.eup %4431  ;;  %4457 = vpow2.f32 %v3634_v4  ;;  %v3763_v29 = vsub.f32 %v5184_v11, %v5189_v32  ;;  %v3544_v62 = vmul.f32 1.442695, %v3542_v49 }
 0x1f6   : > { %v4434_v13 = vpop.eup %4433  ;;  %4459 = vpow2.f32 %v3434_v61  ;;  %v3586_v56 = vsub.f32 %v5091_v9, %v5222_v34  ;;  %v3608_v6 = vsub.f32 %v5104_v63, %v5222_v34  ;;  %v3630_v9 = vsub.f32 %v5117_v31, %v5222_v34 }
 0x1f7   : > { %v3417_v54 = vadd.f32 %v4432_v24, %v3395_v33  ;;  %v4436_v53 = vpop.eup %4435  ;;  %4461 = vpow2.f32 %v3656_v3  ;;  %v3766_v18 = vmul.f32 1.442695, %v3763_v29  ;;  %v3566_v24 = vmul.f32 1.442695, %v3564_v12 }
 0x1f8   : > { %v4438_v36 = vpop.eup %4437  ;;  %4463 = vpow2.f32 %v3456_v20  ;;  %v3588_v46 = vmul.f32 1.442695, %v3586_v56  ;;  %v3610_v4 = vmul.f32 1.442695, %v3608_v6  ;;  %v3652_v63 = vsub.f32 %v5130_v42, %v5222_v34 }
 0x1f9   : > { %v3439_v38 = vadd.f32 %v4434_v13, %v3417_v54  ;;  %v4440_v58 = vpop.eup %4439  ;;  %4465 = vpow2.f32 %v3678_v17  ;;  %v3632_v19 = vmul.f32 1.442695, %v3630_v9  ;;  %v3718_v51 = vsub.f32 %v5166_v45, %v5222_v34 }
 0x1fa   : > { %v4442_v50 = vpop.eup %4441  ;;  %4467 = vpow2.f32 %v3478_v15  ;;  %v3654_v25 = vmul.f32 1.442695, %v3652_v63 }
 0x1fb   : > { %v3461_v57 = vadd.f32 %v4436_v53, %v3439_v38  ;;  %v4444_v48 = vpop.eup %4443  ;;  %4469 = vpow2.f32 %v3700_v28  ;;  %v3720_v29 = vmul.f32 1.442695, %v3718_v51 }
 0x1fc   : > { %v4446_v55 = vpop.eup %4445  ;;  %4471 = vpow2.f32 %v3500_v10  ;;  %v3740_v10 = vsub.f32 %v5178_v0, %v5222_v34 }
 0x1fd   : > { %v3483_v39 = vadd.f32 %v4438_v36, %v3461_v57  ;;  %v4448_v33 = vpop.eup %4447  ;;  %4473 = vpow2.f32 %v3722_v8  ;;  %v3674_v57 = vsub.f32 %v5142_v52, %v5222_v34 }
 0x1fe   : > { %v4450_v11 = vpop.eup %4449  ;;  %4475 = vpow2.f32 %v3522_v41 }
 0x1ff   : > { %v3505_v23 = vadd.f32 %v4440_v58, %v3483_v39  ;;  %v4452_v21 = vpop.eup %4451  ;;  %4477 = vpow2.f32 %v3744_v1  ;;  %v3696_v39 = vsub.f32 %v5154_v35, %v5222_v34  ;;  %v3676_v15 = vmul.f32 1.442695, %v3674_v57 }
 0x200   : > { %v4454_v54 = vpop.eup %4453  ;;  %v3394_v43 = vadd.f32 %v4452_v21, %v4450_v11  ;;  %4479 = vpow2.f32 %v3544_v62  ;;  %v3742_v1 = vmul.f32 1.442695, %v3740_v10 }
 0x201   : > { %v3527_v16 = vadd.f32 %v4442_v50, %v3505_v23  ;;  %v4456_v13 = vpop.eup %4455  ;;  %4481 = vpow2.f32 %v3766_v18  ;;  %v3698_v50 = vmul.f32 1.442695, %v3696_v39 }
 0x202   : > { %v4458_v26 = vpop.eup %4457  ;;  %v3416_v38 = vadd.f32 %v4456_v13, %v3394_v43  ;;  %4483 = vpow2.f32 %v3566_v24 }
 0x203   : > { %v3549_v37 = vadd.f32 %v4444_v48, %v3527_v16  ;;  %v4460_v22 = vpop.eup %4459  ;;  %4485 = vpow2.f32 %v3588_v46  ;;  %v3762_v48 = vsub.f32 %v5212_v59, %v5222_v34 }
 0x204   : > { %v4462_v2 = vpop.eup %4461  ;;  %v3438_v61 = vadd.f32 %v4460_v22, %v3416_v38  ;;  %4487 = vpow2.f32 %v3610_v4 }
 0x205   : > { %v3571_v47 = vadd.f32 %v4446_v55, %v3549_v37  ;;  %v4464_v31 = vpop.eup %4463  ;;  %4489 = vpow2.f32 %v3632_v19  ;;  %v3764_v0 = vmul.f32 1.442695, %v3762_v48 }
 0x206   : > { %v4466_v36 = vpop.eup %4465  ;;  %v3460_v20 = vadd.f32 %v4464_v31, %v3438_v61  ;;  %4491 = vpow2.f32 %v3654_v25  ;;  %v3801_v61 = vld [vmem:[%s4785_s13 + $0x8] sm:$0xff]  ;;  %v3800_v25 = vld [vmem:[%s4785_s13] sm:$0xff] }
 0x207   : > { %v3593_v30 = vadd.f32 %v4448_v33, %v3571_v47  ;;  %v4468_v17 = vpop.eup %4467  ;;  %4493 = vpow2.f32 %v3676_v15 }
 0x208   : > { %v4470_v5 = vpop.eup %4469  ;;  %v3482_v58 = vadd.f32 %v4468_v17, %v3460_v20  ;;  %4495 = vpow2.f32 %v3698_v50 }
 0x209   : > { %v3615_v44 = vadd.f32 %v4454_v54, %v3593_v30  ;;  %v4472_v23 = vpop.eup %4471  ;;  %4497 = vpow2.f32 %v3720_v29 }
 0x20a   : > { %v4474_v28 = vpop.eup %4473  ;;  %v3504_v40 = vadd.f32 %v4472_v23, %v3482_v58 }
 0x20b   : > { %v3637_v53 = vadd.f32 %v4458_v26, %v3615_v44  ;;  %v4476_v49 = vpop.eup %4475 }
 0x20c   : > { %v4478_v16 = vpop.eup %4477  ;;  %v3526_v8 = vadd.f32 %v4476_v49, %v3504_v40 }
 0x20d   : > { %v3659_v3 = vadd.f32 %v4462_v2, %v3637_v53  ;;  %v4480_v41 = vpop.eup %4479 }
 0x20e   : > { %v4482_v12 = vpop.eup %4481  ;;  %v3548_v37 = vadd.f32 %v4480_v41, %v3526_v8 }
 0x20f   : > { %v3681_v42 = vadd.f32 %v4466_v36, %v3659_v3  ;;  %v4484_v55 = vpop.eup %4483 }
 0x210   : > { %v3570_v56 = vadd.f32 %v4484_v55, %v3548_v37  ;;  %v4486_v33 = vpop.eup %4485 }
 0x211   : > { %v3703_v52 = vadd.f32 %v4470_v5, %v3681_v42  ;;  %v4488_v18 = vpop.eup %4487 }
 0x212   : > { %v3592_v47 = vadd.f32 %v4486_v33, %v3570_v56  ;;  %v4490_v24 = vpop.eup %4489 }
 0x213   : > { %v3725_v35 = vadd.f32 %v4474_v28, %v3703_v52  ;;  %v4492_v6 = vpop.eup %4491 }
 0x214   : > { %v3614_v11 = vadd.f32 %v4488_v18, %v3592_v47  ;;  %v4494_v30 = vpop.eup %4493 }
 0x215   : > { %v3747_v45 = vadd.f32 %v4478_v16, %v3725_v35  ;;  %v4496_v43 = vpop.eup %4495 }
 0x216   : > { %v3636_v59 = vadd.f32 %v4490_v24, %v3614_v11  ;;  %v4498_v9 = vpop.eup %4497 }
 0x217   : > { %v3769_v62 = vadd.f32 %v4482_v12, %v3747_v45 }
 0x218   : > { %v3658_v21 = vadd.f32 %v4492_v6, %v3636_v59 }
 0x219   : > { %4499 = vlog2.f32 %v3769_v62 }
 0x21a   : > { %4501 = vpow2.f32 %v3742_v1  ;;  %v3680_v54 = vadd.f32 %v4494_v30, %v3658_v21 }
 0x21b   : > { %4503 = vpow2.f32 %v3764_v0 }
 0x21c   : > { %v3702_v46 = vadd.f32 %v4496_v43, %v3680_v54 }
 0x21e   : > { %v3724_v44 = vadd.f32 %v4498_v9, %v3702_v46 }
 0x226   : > { %v4500_v13 = vpop.eup %4499 }
 0x227   : > { %v4502_v26 = vpop.eup %4501  ;;  %v3793_v38 = vmul.f32 0.6931472, %v4500_v13 }
 0x228   : > { %v3746_v4 = vadd.f32 %v4502_v26, %v3724_v44  ;;  %v4504_v63 = vpop.eup %4503 }
 0x229   : > { %v3795_v22 = vadd.f32 %v3793_v38, %v5189_v32 }
 0x22a   : > { %v3768_v53 = vadd.f32 %v4504_v63, %v3746_v4 }
 0x22b   : > { %v3797_v2 = vsub.f32 %v3795_v22, %v5219_v14 }
 0x22c   : > { %4505 = vlog2.f32 %v3768_v53 }
 0x22d   : > { %v3803_v19 = vmul.f32 %v5034_v7, %v3797_v2 }
 0x22f   : > { %v3805_v57 = vadd.f32 %v3803_v19, %v3801_v61 }
 0x231   : > { %3808 = vst.msk [vmem:[%s4785_s13 + $0x8] sm:$0xff] %vm312_vm3, %v3805_v57 }
 0x239   : > { %v4506_v31 = vpop.eup %4505 }
 0x23a   : > { %v3791_v3 = vmul.f32 0.6931472, %v4506_v31 }
 0x23c   : > { %v3794_v36 = vadd.f32 %v3791_v3, %v5222_v34 }
 0x23e   : > { %v3796_v20 = vsub.f32 %v3794_v36, %v5253_v27 }
 0x240   : > { %v3802_v39 = vmul.f32 %v5098_v60, %v3796_v20 }
 0x242   : > { %v3804_v32 = vadd.f32 %v3802_v39, %v3800_v25 }
 0x244   : > { %3807 = vst.msk [vmem:[%s4785_s13] sm:$0xff] %vm312_vm3, %v3804_v32 }
 0x245 PF: > { %s16_s20 = sadd.s32 1, %s4529_s20   ;;  %s5314_s18 = smov %s4525_s19 }
 0x246   : > { %p13_p5 = scmp.ge.s32.totalorder %s16_s20, 4   ;;  %s5315_s19 = smov %s5317_s21 }
 0x248   :  { %15 = sbr.rel (!%p13_p5) target bundleno = 2 (0x2), region = 106 }

</bundles_post_ra>
